<compile_context>
chip_gen: v7x
topology: tpu7x:2x2x1
jax: 0.10.0
libtpu: 0.0.40
codegen_flags: <defaults>
</compile_context>

<pallas_src>
import functools

import numpy as np
import jax
import jax.numpy as jnp
from jax import lax
from jax.experimental import pallas as pl
from jax.experimental.pallas import tpu as pltpu


def basic_block_kernel(pre_ref, x_ref, st_ref, bm_ref,
                       w1_ref, s1_ref, b1_ref, w2_ref, s2_ref, b2_ref,
                       out_ref, xe_ref, slab_ref, *, width, last_relu):
    # pre_ref : (1, Cin+Cout, mh*mw)  low-res masks (mask1 rows, then mask2 rows)
    # x_ref   : (1, Cin, H*W)         input image, channels-major, flat spatial
    # st_ref  : (mh*mw, H*W)          constant nearest-resize selection matrix
    # bm_ref  : (9, H*W)              constant per-tap border-validity masks
    # w*_ref  : (Cout, 9*C)           bf16 im2col weights (tap-major, ch-minor)
    # s*/b*   : (Cout, 1)             folded BN scale / bias
    # xe_ref  : VMEM (Cin, H*W + 2*pad) flat zero-apron staging buffer
    # slab_ref: VMEM (9*Cin, H*W)       im2col slab (matmul RHS)
    cin = x_ref.shape[1]
    hw = x_ref.shape[2]
    cout = out_ref.shape[1]
    pad = (xe_ref.shape[1] - hw) // 2           # aligned (multiple of 128) apron

    # ---- expand the tiny mask to full resolution in-kernel (one small dot) ----
    m12 = jnp.dot(pre_ref[0], st_ref[...], preferred_element_type=jnp.float32)
    m1 = m12[0:cin, :]                          # (Cin,  H*W) mask1
    m2 = m12[cin:cin + cout, :]                 # (Cout, H*W) mask2

    x = x_ref[0]                                # (Cin, H*W) f32, aligned load

    def conv3x3(v, wk_ref):
        # stage v inside a flat zero apron (aligned stores, no padded image)
        zstrip = jnp.zeros((cin, pad), jnp.float32)
        xe_ref[:, 0:pad] = zstrip
        xe_ref[:, pad + hw:pad + hw + pad] = zstrip
        xe_ref[:, pad:pad + hw] = v
        xe = xe_ref[...]                        # (Cin, H*W + 2*pad)

        # build the im2col slab: row block t holds the tap-(dh,dw) shifted image
        for dh in range(3):
            for dw in range(3):
                t = dh * 3 + dw
                off = (dh - 1) * width + (dw - 1)
                if off == 0:
                    patch = v                                   # centre tap
                else:
                    patch = xe[:, pad + off:pad + off + hw]
                    patch = patch * bm_ref[t:t + 1, :]          # zero invalid px
                slab_ref[t * cin:(t + 1) * cin, :] = patch

        # single fused matmul: (Cout, 9*Cin) @ (9*Cin, H*W), bf16 -> f32
        return jnp.dot(wk_ref[...], slab_ref[...].astype(jnp.bfloat16),
                       preferred_element_type=jnp.float32)

    # out = conv1(x * mask1); bn1; relu
    y = conv3x3(x * m1, w1_ref)
    y = jnp.maximum(y * s1_ref[...] + b1_ref[...], 0.0)

    # out = conv2(out * mask2); bn2; + residual; (relu)
    z = conv3x3(y * m2, w2_ref)
    z = z * s2_ref[...] + b2_ref[...] + x
    if last_relu:
        z = jnp.maximum(z, 0.0)
    out_ref[0] = z.astype(out_ref.dtype)


def expand_mask(mask, c):
    # (b, g, mh, mw) -> (b, c, mh, mw); channels chunked per group
    # (matches mask.unsqueeze(1).repeat(...).transpose(1,2).reshape(...))
    b, g, mh, mw = mask.shape
    if g > 1:
        return jnp.repeat(mask, c // g, axis=1)
    return jnp.broadcast_to(mask, (b, c, mh, mw))


def nearest_resize_nchw(m, h, w):
    # F.interpolate(..., size=(h, w)), default mode='nearest'
    b, c, mh, mw = m.shape
    ih = (jnp.arange(h) * mh) // h
    iw = (jnp.arange(w) * mw) // w
    return m[:, :, ih[:, None], iw[None, :]]


def basic_block_refine(x_nchw, mask, params, *, last_relu=True):
    w1, s1, b1, w2, s2, b2 = (params[k] for k in
                              ("w1", "s1", "b1", "w2", "s2", "b2"))
    b, cin, h, w = x_nchw.shape
    cout = w1.shape[0]
    assert cin == cout, "downsample / channel-changing path not implemented"
    g, mh, mw = mask.shape[1], mask.shape[2], mask.shape[3]
    hw = h * w
    pad = ((w + 1 + 127) // 128) * 128          # aligned zero apron width

    # ---- tiny host-side constants (DMA'd once, stay VMEM-resident) ----------
    src_i = (np.arange(h) * mh) // h            # nearest-resize source rows
    src_j = (np.arange(w) * mw) // w            # nearest-resize source cols
    pix_src = (src_i[:, None] * mw + src_j[None, :]).reshape(hw)
    st = (np.arange(mh * mw)[:, None] == pix_src[None, :]).astype(np.float32)

    bm = np.zeros((9, h, w), np.float32)
    for dh in range(3):
        for dw in range(3):
            ok_i = (np.arange(h) + dh - 1 >= 0) & (np.arange(h) + dh - 1 < h)
            ok_j = (np.arange(w) + dw - 1 >= 0) & (np.arange(w) + dw - 1 < w)
            bm[dh * 3 + dw] = (ok_i[:, None] & ok_j[None, :]).astype(np.float32)
    bm = bm.reshape(9, hw)

    # ---- per-image low-res masks, channel-expanded only (tiny) --------------
    pre = jnp.concatenate([expand_mask(mask, cin), expand_mask(mask, cout)],
                          axis=1).reshape(b, cin + cout, mh * mw)
    pre = pre.astype(jnp.float32)

    # ---- weights as bf16 im2col matrices, folded BN as (C, 1) ---------------
    w1k = jnp.transpose(w1, (0, 2, 3, 1)).reshape(cout, 9 * cin).astype(jnp.bfloat16)
    w2k = jnp.transpose(w2, (0, 2, 3, 1)).reshape(cout, 9 * cout).astype(jnp.bfloat16)
    s1_ = s1.reshape(cout, 1).astype(jnp.float32)
    b1_ = b1.reshape(cout, 1).astype(jnp.float32)
    s2_ = s2.reshape(cout, 1).astype(jnp.float32)
    b2_ = b2.reshape(cout, 1).astype(jnp.float32)

    x_flat = x_nchw.reshape(b, cin, hw)          # free reshape (no transpose)

    kernel = functools.partial(basic_block_kernel, width=w, last_relu=last_relu)
    out_flat = pl.pallas_call(
        kernel,
        out_shape=jax.ShapeDtypeStruct((b, cout, hw), x_nchw.dtype),
        grid_spec=pltpu.PrefetchScalarGridSpec(
            num_scalar_prefetch=0,
            grid=(b,),
            in_specs=[
                pl.BlockSpec((1, cin + cout, mh * mw), lambda i: (i, 0, 0)),
                pl.BlockSpec((1, cin, hw), lambda i: (i, 0, 0)),
                pl.BlockSpec((mh * mw, hw), lambda i: (0, 0)),
                pl.BlockSpec((9, hw), lambda i: (0, 0)),
                pl.BlockSpec((cout, 9 * cin), lambda i: (0, 0)),
                pl.BlockSpec((cout, 1), lambda i: (0, 0)),
                pl.BlockSpec((cout, 1), lambda i: (0, 0)),
                pl.BlockSpec((cout, 9 * cout), lambda i: (0, 0)),
                pl.BlockSpec((cout, 1), lambda i: (0, 0)),
                pl.BlockSpec((cout, 1), lambda i: (0, 0)),
            ],
            out_specs=pl.BlockSpec((1, cout, hw), lambda i: (i, 0, 0)),
            scratch_shapes=[
                pltpu.VMEM((cin, hw + 2 * pad), jnp.float32),   # flat apron buf
                pltpu.VMEM((9 * cin, hw), jnp.float32),         # im2col slab
            ],
        ),
        compiler_params=pltpu.CompilerParams(
            dimension_semantics=("parallel",)),
    )(pre, x_flat, jnp.asarray(st), jnp.asarray(bm),
      w1k, s1_, b1_, w2k, s2_, b2_)

    return out_flat.reshape(b, cout, h, w)       # free reshape back to NCHW


def ref_forward(x, mask, params, *, last_relu=True):
    # pure-JAX reference (NCHW), same folded-BN semantics, same bf16 operand
    # quantisation points as the kernel (f32 accumulation).
    b, c, h, w = x.shape
    w1, s1, b1, w2, s2, b2 = (params[k] for k in
                              ("w1", "s1", "b1", "w2", "s2", "b2"))
    cout = w1.shape[0]
    dn = ("NCHW", "OIHW", "NCHW")
    m1 = nearest_resize_nchw(expand_mask(mask, c), h, w)
    out = x * m1
    out = lax.conv_general_dilated(out.astype(jnp.bfloat16),
                                   w1.astype(jnp.bfloat16),
                                   (1, 1), ((1, 1), (1, 1)),
                                   dimension_numbers=dn,
                                   preferred_element_type=jnp.float32)
    out = out * s1.reshape(1, cout, 1, 1) + b1.reshape(1, cout, 1, 1)
    out = jnp.maximum(out, 0.0)
    m2 = nearest_resize_nchw(expand_mask(mask, cout), h, w)
    out = out * m2
    out = lax.conv_general_dilated(out.astype(jnp.bfloat16),
                                   w2.astype(jnp.bfloat16),
                                   (1, 1), ((1, 1), (1, 1)),
                                   dimension_numbers=dn,
                                   preferred_element_type=jnp.float32)
    out = out * s2.reshape(1, cout, 1, 1) + b2.reshape(1, cout, 1, 1)
    out = out + x
    if last_relu:
        out = jnp.maximum(out, 0.0)
    return out


if __name__ == "__main__":
    key = jax.random.PRNGKey(0)
    B, C, H, W = 2, 8, 16, 16       # inplanes = planes = 8 (expansion = 1)
    G, MH = 2, 4                    # mask: (B, G, MH, MH)
    ks = jax.random.split(key, 12)

    x = jax.random.normal(ks[0], (B, C, H, W), jnp.float32)
    mask = jax.random.bernoulli(ks[1], 0.6, (B, G, MH, MH)).astype(jnp.float32)

    eps = 1e-5
    w1 = 0.1 * jax.random.normal(ks[2], (C, C, 3, 3), jnp.float32)
    w2 = 0.1 * jax.random.normal(ks[3], (C, C, 3, 3), jnp.float32)
    g1 = jax.random.uniform(ks[4], (C,), minval=0.5, maxval=1.5)
    be1 = 0.1 * jax.random.normal(ks[5], (C,))
    rm1 = 0.1 * jax.random.normal(ks[6], (C,))
    rv1 = jax.random.uniform(ks[7], (C,), minval=0.5, maxval=1.5)
    g2 = jax.random.uniform(ks[8], (C,), minval=0.5, maxval=1.5)
    be2 = 0.1 * jax.random.normal(ks[9], (C,))
    rm2 = 0.1 * jax.random.normal(ks[10], (C,))
    rv2 = jax.random.uniform(ks[11], (C,), minval=0.5, maxval=1.5)

    # fold BatchNorm (eval mode) into per-channel scale / bias
    s1 = g1 / jnp.sqrt(rv1 + eps)
    b1 = be1 - rm1 * s1
    s2 = g2 / jnp.sqrt(rv2 + eps)
    b2 = be2 - rm2 * s2
    params = dict(w1=w1, s1=s1, b1=b1, w2=w2, s2=s2, b2=b2)

    out = basic_block_refine(x, mask, params, last_relu=True)
    out = jax.block_until_ready(out)

    ref = ref_forward(x, mask, params, last_relu=True)
    np.testing.assert_allclose(np.asarray(out), np.asarray(ref),
                               rtol=1e-2, atol=1e-2)
    print("KERNEL_OK")
</pallas_src>

<mosaic_0001>
module attributes {stable_mosaic.version = 11 : i64} {
  func.func @basic_block_kernel(%arg0: i32, %arg1: memref<1x16x16xf32, #tpu.memory_space<vmem>>, %arg2: memref<1x8x256xf32, #tpu.memory_space<vmem>>, %arg3: memref<16x256xf32, #tpu.memory_space<vmem>>, %arg4: memref<9x256xf32, #tpu.memory_space<vmem>>, %arg5: memref<8x72xbf16, #tpu.memory_space<vmem>>, %arg6: memref<8x1xf32, #tpu.memory_space<vmem>>, %arg7: memref<8x1xf32, #tpu.memory_space<vmem>>, %arg8: memref<8x72xbf16, #tpu.memory_space<vmem>>, %arg9: memref<8x1xf32, #tpu.memory_space<vmem>>, %arg10: memref<8x1xf32, #tpu.memory_space<vmem>>, %arg11: memref<1x8x256xf32, #tpu.memory_space<vmem>>, %arg12: memref<8x512xf32, #tpu.memory_space<vmem>>, %arg13: memref<72x256xf32, #tpu.memory_space<vmem>>) attributes {dimension_semantics = [#tpu.dimension_semantics<parallel>], iteration_bounds = array<i64: 2>, scalar_prefetch = 0 : i64, scratch_operands = 2 : i64, tpu.core_type = #tpu.core_type<tc>, window_params = [{transform_indices = @transform_0, window_bounds = array<i64: 1, 16, 16>}, {transform_indices = @transform_1, window_bounds = array<i64: 1, 8, 256>}, {pipeline_mode = #tpu.pipeline_mode<synchronous>, transform_indices = @transform_2, window_bounds = array<i64: 16, 256>}, {pipeline_mode = #tpu.pipeline_mode<synchronous>, transform_indices = @transform_3, window_bounds = array<i64: 9, 256>}, {pipeline_mode = #tpu.pipeline_mode<synchronous>, transform_indices = @transform_4, window_bounds = array<i64: 8, 72>}, {pipeline_mode = #tpu.pipeline_mode<synchronous>, transform_indices = @transform_5, window_bounds = array<i64: 8, 1>}, {pipeline_mode = #tpu.pipeline_mode<synchronous>, transform_indices = @transform_6, window_bounds = array<i64: 8, 1>}, {pipeline_mode = #tpu.pipeline_mode<synchronous>, transform_indices = @transform_7, window_bounds = array<i64: 8, 72>}, {pipeline_mode = #tpu.pipeline_mode<synchronous>, transform_indices = @transform_8, window_bounds = array<i64: 8, 1>}, {pipeline_mode = #tpu.pipeline_mode<synchronous>, transform_indices = @transform_9, window_bounds = array<i64: 8, 1>}, {transform_indices = @transform_10, window_bounds = array<i64: 1, 8, 256>}]} {
    %c0 = arith.constant 0 : index
    %c0_0 = arith.constant 0 : index
    %c0_1 = arith.constant 0 : index
    %0 = vector.load %arg1[%c0, %c0_0, %c0_1] : memref<1x16x16xf32, #tpu.memory_space<vmem>>, vector<1x16x16xf32>
    %1 = vector.shape_cast %0 : vector<1x16x16xf32> to vector<16x16xf32>
    %c0_2 = arith.constant 0 : index
    %c0_3 = arith.constant 0 : index
    %2 = vector.load %arg3[%c0_2, %c0_3] : memref<16x256xf32, #tpu.memory_space<vmem>>, vector<16x256xf32>
    %cst = arith.constant dense<0.000000e+00> : vector<16x256xf32>
    %3 = tpu.matmul %1, %2, %cst {dimension_numbers = #tpu.dot_dimension_numbers<[1], [0], [0], [1], [0, 0, 1, 1], [], []>} : vector<16x16xf32>, vector<16x256xf32>, vector<16x256xf32> -> vector<16x256xf32>
    %4 = vector.extract_strided_slice %3 {offsets = [0, 0], sizes = [8, 256], strides = [1, 1]} : vector<16x256xf32> to vector<8x256xf32>
    %5 = vector.extract_strided_slice %3 {offsets = [8, 0], sizes = [8, 256], strides = [1, 1]} : vector<16x256xf32> to vector<8x256xf32>
    %c0_4 = arith.constant 0 : index
    %c0_5 = arith.constant 0 : index
    %c0_6 = arith.constant 0 : index
    %6 = vector.load %arg2[%c0_4, %c0_5, %c0_6] : memref<1x8x256xf32, #tpu.memory_space<vmem>>, vector<1x8x256xf32>
    %7 = vector.shape_cast %6 : vector<1x8x256xf32> to vector<8x256xf32>
    %8 = arith.mulf %7, %4 : vector<8x256xf32>
    %cst_7 = arith.constant 0.000000e+00 : f32
    %9 = vector.broadcast %cst_7 : f32 to vector<8x128xf32>
    %c0_8 = arith.constant 0 : index
    %c0_9 = arith.constant 0 : index
    %10 = vector.load %arg12[%c0_8, %c0_9] : memref<8x512xf32, #tpu.memory_space<vmem>>, vector<8x128xf32>
    tpu.vector_store %arg12[%c0_8, %c0_9], %9 {strides = array<i32>} : memref<8x512xf32, #tpu.memory_space<vmem>>, vector<8x128xf32>,
    %c0_10 = arith.constant 0 : index
    %c384 = arith.constant 384 : index
    %11 = vector.load %arg12[%c0_10, %c384] : memref<8x512xf32, #tpu.memory_space<vmem>>, vector<8x128xf32>
    tpu.vector_store %arg12[%c0_10, %c384], %9 {strides = array<i32>} : memref<8x512xf32, #tpu.memory_space<vmem>>, vector<8x128xf32>,
    %c0_11 = arith.constant 0 : index
    %c128 = arith.constant 128 : index
    %12 = vector.load %arg12[%c0_11, %c128] : memref<8x512xf32, #tpu.memory_space<vmem>>, vector<8x256xf32>
    tpu.vector_store %arg12[%c0_11, %c128], %8 {strides = array<i32>} : memref<8x512xf32, #tpu.memory_space<vmem>>, vector<8x256xf32>,
    %c0_12 = arith.constant 0 : index
    %c0_13 = arith.constant 0 : index
    %13 = vector.load %arg12[%c0_12, %c0_13] : memref<8x512xf32, #tpu.memory_space<vmem>>, vector<8x512xf32>
    %14 = vector.extract_strided_slice %13 {offsets = [0, 111], sizes = [8, 256], strides = [1, 1]} : vector<8x512xf32> to vector<8x256xf32>
    %c0_14 = arith.constant 0 : index
    %c0_15 = arith.constant 0 : index
    %15 = vector.load %arg4[%c0_14, %c0_15] : memref<9x256xf32, #tpu.memory_space<vmem>>, vector<1x256xf32>
    %16 = vector.broadcast %15 : vector<1x256xf32> to vector<8x256xf32>
    %17 = arith.mulf %14, %16 : vector<8x256xf32>
    %c0_16 = arith.constant 0 : index
    %c0_17 = arith.constant 0 : index
    %18 = vector.load %arg13[%c0_16, %c0_17] : memref<72x256xf32, #tpu.memory_space<vmem>>, vector<8x256xf32>
    tpu.vector_store %arg13[%c0_16, %c0_17], %17 {strides = array<i32>} : memref<72x256xf32, #tpu.memory_space<vmem>>, vector<8x256xf32>,
    %19 = vector.extract_strided_slice %13 {offsets = [0, 112], sizes = [8, 256], strides = [1, 1]} : vector<8x512xf32> to vector<8x256xf32>
    %c1 = arith.constant 1 : index
    %c0_18 = arith.constant 0 : index
    %20 = vector.load %arg4[%c1, %c0_18] : memref<9x256xf32, #tpu.memory_space<vmem>>, vector<1x256xf32>
    %21 = vector.broadcast %20 : vector<1x256xf32> to vector<8x256xf32>
    %22 = arith.mulf %19, %21 : vector<8x256xf32>
    %c8 = arith.constant 8 : index
    %c0_19 = arith.constant 0 : index
    %23 = vector.load %arg13[%c8, %c0_19] : memref<72x256xf32, #tpu.memory_space<vmem>>, vector<8x256xf32>
    tpu.vector_store %arg13[%c8, %c0_19], %22 {strides = array<i32>} : memref<72x256xf32, #tpu.memory_space<vmem>>, vector<8x256xf32>,
    %24 = vector.extract_strided_slice %13 {offsets = [0, 113], sizes = [8, 256], strides = [1, 1]} : vector<8x512xf32> to vector<8x256xf32>
    %c2 = arith.constant 2 : index
    %c0_20 = arith.constant 0 : index
    %25 = vector.load %arg4[%c2, %c0_20] : memref<9x256xf32, #tpu.memory_space<vmem>>, vector<1x256xf32>
    %26 = vector.broadcast %25 : vector<1x256xf32> to vector<8x256xf32>
    %27 = arith.mulf %24, %26 : vector<8x256xf32>
    %c16 = arith.constant 16 : index
    %c0_21 = arith.constant 0 : index
    %28 = vector.load %arg13[%c16, %c0_21] : memref<72x256xf32, #tpu.memory_space<vmem>>, vector<8x256xf32>
    tpu.vector_store %arg13[%c16, %c0_21], %27 {strides = array<i32>} : memref<72x256xf32, #tpu.memory_space<vmem>>, vector<8x256xf32>,
    %29 = vector.extract_strided_slice %13 {offsets = [0, 127], sizes = [8, 256], strides = [1, 1]} : vector<8x512xf32> to vector<8x256xf32>
    %c3 = arith.constant 3 : index
    %c0_22 = arith.constant 0 : index
    %30 = vector.load %arg4[%c3, %c0_22] : memref<9x256xf32, #tpu.memory_space<vmem>>, vector<1x256xf32>
    %31 = vector.broadcast %30 : vector<1x256xf32> to vector<8x256xf32>
    %32 = arith.mulf %29, %31 : vector<8x256xf32>
    %c24 = arith.constant 24 : index
    %c0_23 = arith.constant 0 : index
    %33 = vector.load %arg13[%c24, %c0_23] : memref<72x256xf32, #tpu.memory_space<vmem>>, vector<8x256xf32>
    tpu.vector_store %arg13[%c24, %c0_23], %32 {strides = array<i32>} : memref<72x256xf32, #tpu.memory_space<vmem>>, vector<8x256xf32>,
    %c32 = arith.constant 32 : index
    %c0_24 = arith.constant 0 : index
    %34 = vector.load %arg13[%c32, %c0_24] : memref<72x256xf32, #tpu.memory_space<vmem>>, vector<8x256xf32>
    tpu.vector_store %arg13[%c32, %c0_24], %8 {strides = array<i32>} : memref<72x256xf32, #tpu.memory_space<vmem>>, vector<8x256xf32>,
    %35 = vector.extract_strided_slice %13 {offsets = [0, 129], sizes = [8, 256], strides = [1, 1]} : vector<8x512xf32> to vector<8x256xf32>
    %c5 = arith.constant 5 : index
    %c0_25 = arith.constant 0 : index
    %36 = vector.load %arg4[%c5, %c0_25] : memref<9x256xf32, #tpu.memory_space<vmem>>, vector<1x256xf32>
    %37 = vector.broadcast %36 : vector<1x256xf32> to vector<8x256xf32>
    %38 = arith.mulf %35, %37 : vector<8x256xf32>
    %c40 = arith.constant 40 : index
    %c0_26 = arith.constant 0 : index
    %39 = vector.load %arg13[%c40, %c0_26] : memref<72x256xf32, #tpu.memory_space<vmem>>, vector<8x256xf32>
    tpu.vector_store %arg13[%c40, %c0_26], %38 {strides = array<i32>} : memref<72x256xf32, #tpu.memory_space<vmem>>, vector<8x256xf32>,
    %40 = vector.extract_strided_slice %13 {offsets = [0, 143], sizes = [8, 256], strides = [1, 1]} : vector<8x512xf32> to vector<8x256xf32>
    %c6 = arith.constant 6 : index
    %c0_27 = arith.constant 0 : index
    %41 = vector.load %arg4[%c6, %c0_27] : memref<9x256xf32, #tpu.memory_space<vmem>>, vector<1x256xf32>
    %42 = vector.broadcast %41 : vector<1x256xf32> to vector<8x256xf32>
    %43 = arith.mulf %40, %42 : vector<8x256xf32>
    %c48 = arith.constant 48 : index
    %c0_28 = arith.constant 0 : index
    %44 = vector.load %arg13[%c48, %c0_28] : memref<72x256xf32, #tpu.memory_space<vmem>>, vector<8x256xf32>
    tpu.vector_store %arg13[%c48, %c0_28], %43 {strides = array<i32>} : memref<72x256xf32, #tpu.memory_space<vmem>>, vector<8x256xf32>,
    %45 = vector.extract_strided_slice %13 {offsets = [0, 144], sizes = [8, 256], strides = [1, 1]} : vector<8x512xf32> to vector<8x256xf32>
    %c7 = arith.constant 7 : index
    %c0_29 = arith.constant 0 : index
    %46 = vector.load %arg4[%c7, %c0_29] : memref<9x256xf32, #tpu.memory_space<vmem>>, vector<1x256xf32>
    %47 = vector.broadcast %46 : vector<1x256xf32> to vector<8x256xf32>
    %48 = arith.mulf %45, %47 : vector<8x256xf32>
    %c56 = arith.constant 56 : index
    %c0_30 = arith.constant 0 : index
    %49 = vector.load %arg13[%c56, %c0_30] : memref<72x256xf32, #tpu.memory_space<vmem>>, vector<8x256xf32>
    tpu.vector_store %arg13[%c56, %c0_30], %48 {strides = array<i32>} : memref<72x256xf32, #tpu.memory_space<vmem>>, vector<8x256xf32>,
    %50 = vector.extract_strided_slice %13 {offsets = [0, 145], sizes = [8, 256], strides = [1, 1]} : vector<8x512xf32> to vector<8x256xf32>
    %c8_31 = arith.constant 8 : index
    %c0_32 = arith.constant 0 : index
    %51 = vector.load %arg4[%c8_31, %c0_32] : memref<9x256xf32, #tpu.memory_space<vmem>>, vector<1x256xf32>
    %52 = vector.broadcast %51 : vector<1x256xf32> to vector<8x256xf32>
    %53 = arith.mulf %50, %52 : vector<8x256xf32>
    %c64 = arith.constant 64 : index
    %c0_33 = arith.constant 0 : index
    %54 = vector.load %arg13[%c64, %c0_33] : memref<72x256xf32, #tpu.memory_space<vmem>>, vector<8x256xf32>
    tpu.vector_store %arg13[%c64, %c0_33], %53 {strides = array<i32>} : memref<72x256xf32, #tpu.memory_space<vmem>>, vector<8x256xf32>,
    %c0_34 = arith.constant 0 : index
    %c0_35 = arith.constant 0 : index
    %55 = vector.load %arg5[%c0_34, %c0_35] : memref<8x72xbf16, #tpu.memory_space<vmem>>, vector<8x72xbf16>
    %c0_36 = arith.constant 0 : index
    %c0_37 = arith.constant 0 : index
    %56 = vector.load %arg13[%c0_36, %c0_37] : memref<72x256xf32, #tpu.memory_space<vmem>>, vector<72x256xf32>
    %57 = arith.truncf %56 : vector<72x256xf32> to vector<72x256xbf16>
    %cst_38 = arith.constant dense<0.000000e+00> : vector<8x256xf32>
    %58 = tpu.matmul %55, %57, %cst_38 {dimension_numbers = #tpu.dot_dimension_numbers<[1], [0], [0], [1], [0, 0, 1, 1], [], []>} : vector<8x72xbf16>, vector<72x256xbf16>, vector<8x256xf32> -> vector<8x256xf32>
    %c0_39 = arith.constant 0 : index
    %c0_40 = arith.constant 0 : index
    %59 = vector.load %arg6[%c0_39, %c0_40] : memref<8x1xf32, #tpu.memory_space<vmem>>, vector<8x1xf32>
    %60 = vector.broadcast %59 : vector<8x1xf32> to vector<8x256xf32>
    %61 = arith.mulf %58, %60 : vector<8x256xf32>
    %c0_41 = arith.constant 0 : index
    %c0_42 = arith.constant 0 : index
    %62 = vector.load %arg7[%c0_41, %c0_42] : memref<8x1xf32, #tpu.memory_space<vmem>>, vector<8x1xf32>
    %63 = vector.broadcast %62 : vector<8x1xf32> to vector<8x256xf32>
    %64 = arith.addf %61, %63 : vector<8x256xf32>
    %cst_43 = arith.constant 0.000000e+00 : f32
    %65 = vector.broadcast %cst_43 : f32 to vector<8x256xf32>
    %66 = arith.maximumf %64, %65 : vector<8x256xf32>
    %67 = arith.mulf %66, %5 : vector<8x256xf32>
    %cst_44 = arith.constant 0.000000e+00 : f32
    %68 = vector.broadcast %cst_44 : f32 to vector<8x128xf32>
    %c0_45 = arith.constant 0 : index
    %c0_46 = arith.constant 0 : index
    %69 = vector.load %arg12[%c0_45, %c0_46] : memref<8x512xf32, #tpu.memory_space<vmem>>, vector<8x128xf32>
    tpu.vector_store %arg12[%c0_45, %c0_46], %68 {strides = array<i32>} : memref<8x512xf32, #tpu.memory_space<vmem>>, vector<8x128xf32>,
    %c0_47 = arith.constant 0 : index
    %c384_48 = arith.constant 384 : index
    %70 = vector.load %arg12[%c0_47, %c384_48] : memref<8x512xf32, #tpu.memory_space<vmem>>, vector<8x128xf32>
    tpu.vector_store %arg12[%c0_47, %c384_48], %68 {strides = array<i32>} : memref<8x512xf32, #tpu.memory_space<vmem>>, vector<8x128xf32>,
    %c0_49 = arith.constant 0 : index
    %c128_50 = arith.constant 128 : index
    %71 = vector.load %arg12[%c0_49, %c128_50] : memref<8x512xf32, #tpu.memory_space<vmem>>, vector<8x256xf32>
    tpu.vector_store %arg12[%c0_49, %c128_50], %67 {strides = array<i32>} : memref<8x512xf32, #tpu.memory_space<vmem>>, vector<8x256xf32>,
    %c0_51 = arith.constant 0 : index
    %c0_52 = arith.constant 0 : index
    %72 = vector.load %arg12[%c0_51, %c0_52] : memref<8x512xf32, #tpu.memory_space<vmem>>, vector<8x512xf32>
    %73 = vector.extract_strided_slice %72 {offsets = [0, 111], sizes = [8, 256], strides = [1, 1]} : vector<8x512xf32> to vector<8x256xf32>
    %c0_53 = arith.constant 0 : index
    %c0_54 = arith.constant 0 : index
    %74 = vector.load %arg4[%c0_53, %c0_54] : memref<9x256xf32, #tpu.memory_space<vmem>>, vector<1x256xf32>
    %75 = vector.broadcast %74 : vector<1x256xf32> to vector<8x256xf32>
    %76 = arith.mulf %73, %75 : vector<8x256xf32>
    %c0_55 = arith.constant 0 : index
    %c0_56 = arith.constant 0 : index
    %77 = vector.load %arg13[%c0_55, %c0_56] : memref<72x256xf32, #tpu.memory_space<vmem>>, vector<8x256xf32>
    tpu.vector_store %arg13[%c0_55, %c0_56], %76 {strides = array<i32>} : memref<72x256xf32, #tpu.memory_space<vmem>>, vector<8x256xf32>,
    %78 = vector.extract_strided_slice %72 {offsets = [0, 112], sizes = [8, 256], strides = [1, 1]} : vector<8x512xf32> to vector<8x256xf32>
    %c1_57 = arith.constant 1 : index
    %c0_58 = arith.constant 0 : index
    %79 = vector.load %arg4[%c1_57, %c0_58] : memref<9x256xf32, #tpu.memory_space<vmem>>, vector<1x256xf32>
    %80 = vector.broadcast %79 : vector<1x256xf32> to vector<8x256xf32>
    %81 = arith.mulf %78, %80 : vector<8x256xf32>
    %c8_59 = arith.constant 8 : index
    %c0_60 = arith.constant 0 : index
    %82 = vector.load %arg13[%c8_59, %c0_60] : memref<72x256xf32, #tpu.memory_space<vmem>>, vector<8x256xf32>
    tpu.vector_store %arg13[%c8_59, %c0_60], %81 {strides = array<i32>} : memref<72x256xf32, #tpu.memory_space<vmem>>, vector<8x256xf32>,
    %83 = vector.extract_strided_slice %72 {offsets = [0, 113], sizes = [8, 256], strides = [1, 1]} : vector<8x512xf32> to vector<8x256xf32>
    %c2_61 = arith.constant 2 : index
    %c0_62 = arith.constant 0 : index
    %84 = vector.load %arg4[%c2_61, %c0_62] : memref<9x256xf32, #tpu.memory_space<vmem>>, vector<1x256xf32>
    %85 = vector.broadcast %84 : vector<1x256xf32> to vector<8x256xf32>
    %86 = arith.mulf %83, %85 : vector<8x256xf32>
    %c16_63 = arith.constant 16 : index
    %c0_64 = arith.constant 0 : index
    %87 = vector.load %arg13[%c16_63, %c0_64] : memref<72x256xf32, #tpu.memory_space<vmem>>, vector<8x256xf32>
    tpu.vector_store %arg13[%c16_63, %c0_64], %86 {strides = array<i32>} : memref<72x256xf32, #tpu.memory_space<vmem>>, vector<8x256xf32>,
    %88 = vector.extract_strided_slice %72 {offsets = [0, 127], sizes = [8, 256], strides = [1, 1]} : vector<8x512xf32> to vector<8x256xf32>
    %c3_65 = arith.constant 3 : index
    %c0_66 = arith.constant 0 : index
    %89 = vector.load %arg4[%c3_65, %c0_66] : memref<9x256xf32, #tpu.memory_space<vmem>>, vector<1x256xf32>
    %90 = vector.broadcast %89 : vector<1x256xf32> to vector<8x256xf32>
    %91 = arith.mulf %88, %90 : vector<8x256xf32>
    %c24_67 = arith.constant 24 : index
    %c0_68 = arith.constant 0 : index
    %92 = vector.load %arg13[%c24_67, %c0_68] : memref<72x256xf32, #tpu.memory_space<vmem>>, vector<8x256xf32>
    tpu.vector_store %arg13[%c24_67, %c0_68], %91 {strides = array<i32>} : memref<72x256xf32, #tpu.memory_space<vmem>>, vector<8x256xf32>,
    %c32_69 = arith.constant 32 : index
    %c0_70 = arith.constant 0 : index
    %93 = vector.load %arg13[%c32_69, %c0_70] : memref<72x256xf32, #tpu.memory_space<vmem>>, vector<8x256xf32>
    tpu.vector_store %arg13[%c32_69, %c0_70], %67 {strides = array<i32>} : memref<72x256xf32, #tpu.memory_space<vmem>>, vector<8x256xf32>,
    %94 = vector.extract_strided_slice %72 {offsets = [0, 129], sizes = [8, 256], strides = [1, 1]} : vector<8x512xf32> to vector<8x256xf32>
    %c5_71 = arith.constant 5 : index
    %c0_72 = arith.constant 0 : index
    %95 = vector.load %arg4[%c5_71, %c0_72] : memref<9x256xf32, #tpu.memory_space<vmem>>, vector<1x256xf32>
    %96 = vector.broadcast %95 : vector<1x256xf32> to vector<8x256xf32>
    %97 = arith.mulf %94, %96 : vector<8x256xf32>
    %c40_73 = arith.constant 40 : index
    %c0_74 = arith.constant 0 : index
    %98 = vector.load %arg13[%c40_73, %c0_74] : memref<72x256xf32, #tpu.memory_space<vmem>>, vector<8x256xf32>
    tpu.vector_store %arg13[%c40_73, %c0_74], %97 {strides = array<i32>} : memref<72x256xf32, #tpu.memory_space<vmem>>, vector<8x256xf32>,
    %99 = vector.extract_strided_slice %72 {offsets = [0, 143], sizes = [8, 256], strides = [1, 1]} : vector<8x512xf32> to vector<8x256xf32>
    %c6_75 = arith.constant 6 : index
    %c0_76 = arith.constant 0 : index
    %100 = vector.load %arg4[%c6_75, %c0_76] : memref<9x256xf32, #tpu.memory_space<vmem>>, vector<1x256xf32>
    %101 = vector.broadcast %100 : vector<1x256xf32> to vector<8x256xf32>
    %102 = arith.mulf %99, %101 : vector<8x256xf32>
    %c48_77 = arith.constant 48 : index
    %c0_78 = arith.constant 0 : index
    %103 = vector.load %arg13[%c48_77, %c0_78] : memref<72x256xf32, #tpu.memory_space<vmem>>, vector<8x256xf32>
    tpu.vector_store %arg13[%c48_77, %c0_78], %102 {strides = array<i32>} : memref<72x256xf32, #tpu.memory_space<vmem>>, vector<8x256xf32>,
    %104 = vector.extract_strided_slice %72 {offsets = [0, 144], sizes = [8, 256], strides = [1, 1]} : vector<8x512xf32> to vector<8x256xf32>
    %c7_79 = arith.constant 7 : index
    %c0_80 = arith.constant 0 : index
    %105 = vector.load %arg4[%c7_79, %c0_80] : memref<9x256xf32, #tpu.memory_space<vmem>>, vector<1x256xf32>
    %106 = vector.broadcast %105 : vector<1x256xf32> to vector<8x256xf32>
    %107 = arith.mulf %104, %106 : vector<8x256xf32>
    %c56_81 = arith.constant 56 : index
    %c0_82 = arith.constant 0 : index
    %108 = vector.load %arg13[%c56_81, %c0_82] : memref<72x256xf32, #tpu.memory_space<vmem>>, vector<8x256xf32>
    tpu.vector_store %arg13[%c56_81, %c0_82], %107 {strides = array<i32>} : memref<72x256xf32, #tpu.memory_space<vmem>>, vector<8x256xf32>,
    %109 = vector.extract_strided_slice %72 {offsets = [0, 145], sizes = [8, 256], strides = [1, 1]} : vector<8x512xf32> to vector<8x256xf32>
    %c8_83 = arith.constant 8 : index
    %c0_84 = arith.constant 0 : index
    %110 = vector.load %arg4[%c8_83, %c0_84] : memref<9x256xf32, #tpu.memory_space<vmem>>, vector<1x256xf32>
    %111 = vector.broadcast %110 : vector<1x256xf32> to vector<8x256xf32>
    %112 = arith.mulf %109, %111 : vector<8x256xf32>
    %c64_85 = arith.constant 64 : index
    %c0_86 = arith.constant 0 : index
    %113 = vector.load %arg13[%c64_85, %c0_86] : memref<72x256xf32, #tpu.memory_space<vmem>>, vector<8x256xf32>
    tpu.vector_store %arg13[%c64_85, %c0_86], %112 {strides = array<i32>} : memref<72x256xf32, #tpu.memory_space<vmem>>, vector<8x256xf32>,
    %c0_87 = arith.constant 0 : index
    %c0_88 = arith.constant 0 : index
    %114 = vector.load %arg8[%c0_87, %c0_88] : memref<8x72xbf16, #tpu.memory_space<vmem>>, vector<8x72xbf16>
    %c0_89 = arith.constant 0 : index
    %c0_90 = arith.constant 0 : index
    %115 = vector.load %arg13[%c0_89, %c0_90] : memref<72x256xf32, #tpu.memory_space<vmem>>, vector<72x256xf32>
    %116 = arith.truncf %115 : vector<72x256xf32> to vector<72x256xbf16>
    %cst_91 = arith.constant dense<0.000000e+00> : vector<8x256xf32>
    %117 = tpu.matmul %114, %116, %cst_91 {dimension_numbers = #tpu.dot_dimension_numbers<[1], [0], [0], [1], [0, 0, 1, 1], [], []>} : vector<8x72xbf16>, vector<72x256xbf16>, vector<8x256xf32> -> vector<8x256xf32>
    %c0_92 = arith.constant 0 : index
    %c0_93 = arith.constant 0 : index
    %118 = vector.load %arg9[%c0_92, %c0_93] : memref<8x1xf32, #tpu.memory_space<vmem>>, vector<8x1xf32>
    %119 = vector.broadcast %118 : vector<8x1xf32> to vector<8x256xf32>
    %120 = arith.mulf %117, %119 : vector<8x256xf32>
    %c0_94 = arith.constant 0 : index
    %c0_95 = arith.constant 0 : index
    %121 = vector.load %arg10[%c0_94, %c0_95] : memref<8x1xf32, #tpu.memory_space<vmem>>, vector<8x1xf32>
    %122 = vector.broadcast %121 : vector<8x1xf32> to vector<8x256xf32>
    %123 = arith.addf %120, %122 : vector<8x256xf32>
    %124 = arith.addf %123, %7 : vector<8x256xf32>
    %cst_96 = arith.constant 0.000000e+00 : f32
    %125 = vector.broadcast %cst_96 : f32 to vector<8x256xf32>
    %126 = arith.maximumf %124, %125 : vector<8x256xf32>
    %c0_97 = arith.constant 0 : index
    %c0_98 = arith.constant 0 : index
    %c0_99 = arith.constant 0 : index
    %127 = vector.load %arg11[%c0_97, %c0_98, %c0_99] : memref<1x8x256xf32, #tpu.memory_space<vmem>>, vector<1x8x256xf32>
    %128 = vector.shape_cast %127 : vector<1x8x256xf32> to vector<8x256xf32>
    %129 = vector.shape_cast %126 : vector<8x256xf32> to vector<1x8x256xf32>
    tpu.vector_store %arg11[%c0_97, %c0_98, %c0_99], %129 {strides = array<i32>} : memref<1x8x256xf32, #tpu.memory_space<vmem>>, vector<1x8x256xf32>,
    return
  }
  func.func @transform_0(%arg0: i32) -> (i32, i32, i32) {
    %c0_i32 = arith.constant 0 : i32
    %c0_i32_0 = arith.constant 0 : i32
    %c0_i32_1 = arith.constant 0 : i32
    return %arg0, %c0_i32, %c0_i32_0 : i32, i32, i32
  }
  func.func @transform_1(%arg0: i32) -> (i32, i32, i32) {
    %c0_i32 = arith.constant 0 : i32
    %c0_i32_0 = arith.constant 0 : i32
    %c0_i32_1 = arith.constant 0 : i32
    return %arg0, %c0_i32, %c0_i32_0 : i32, i32, i32
  }
  func.func @transform_2(%arg0: i32) -> (i32, i32) {
    %c0_i32 = arith.constant 0 : i32
    %c0_i32_0 = arith.constant 0 : i32
    %c0_i32_1 = arith.constant 0 : i32
    return %c0_i32, %c0_i32_0 : i32, i32
  }
  func.func @transform_3(%arg0: i32) -> (i32, i32) {
    %c0_i32 = arith.constant 0 : i32
    %c0_i32_0 = arith.constant 0 : i32
    %c0_i32_1 = arith.constant 0 : i32
    return %c0_i32, %c0_i32_0 : i32, i32
  }
  func.func @transform_4(%arg0: i32) -> (i32, i32) {
    %c0_i32 = arith.constant 0 : i32
    %c0_i32_0 = arith.constant 0 : i32
    %c0_i32_1 = arith.constant 0 : i32
    return %c0_i32, %c0_i32_0 : i32, i32
  }
  func.func @transform_5(%arg0: i32) -> (i32, i32) {
    %c0_i32 = arith.constant 0 : i32
    %c0_i32_0 = arith.constant 0 : i32
    %c0_i32_1 = arith.constant 0 : i32
    return %c0_i32, %c0_i32_0 : i32, i32
  }
  func.func @transform_6(%arg0: i32) -> (i32, i32) {
    %c0_i32 = arith.constant 0 : i32
    %c0_i32_0 = arith.constant 0 : i32
    %c0_i32_1 = arith.constant 0 : i32
    return %c0_i32, %c0_i32_0 : i32, i32
  }
  func.func @transform_7(%arg0: i32) -> (i32, i32) {
    %c0_i32 = arith.constant 0 : i32
    %c0_i32_0 = arith.constant 0 : i32
    %c0_i32_1 = arith.constant 0 : i32
    return %c0_i32, %c0_i32_0 : i32, i32
  }
  func.func @transform_8(%arg0: i32) -> (i32, i32) {
    %c0_i32 = arith.constant 0 : i32
    %c0_i32_0 = arith.constant 0 : i32
    %c0_i32_1 = arith.constant 0 : i32
    return %c0_i32, %c0_i32_0 : i32, i32
  }
  func.func @transform_9(%arg0: i32) -> (i32, i32) {
    %c0_i32 = arith.constant 0 : i32
    %c0_i32_0 = arith.constant 0 : i32
    %c0_i32_1 = arith.constant 0 : i32
    return %c0_i32, %c0_i32_0 : i32, i32
  }
  func.func @transform_10(%arg0: i32) -> (i32, i32, i32) {
    %c0_i32 = arith.constant 0 : i32
    %c0_i32_0 = arith.constant 0 : i32
    %c0_i32_1 = arith.constant 0 : i32
    return %arg0, %c0_i32, %c0_i32_0 : i32, i32, i32
  }
}

</mosaic_0001>

<bundles_post_ra>
// kernel: tpu_custom_call.1
= control target key start
LH: loop header
LB: loop body
LE: loop exit
PB: predicated region body
PF: predicated region fallthrough
CT: control target
= control target key end

     0   :  { %15 = vsyncpa [#allocation5], 0  ;;  %s2343_s0 = inlined_call_operand.vmem [shape: f32[2,16,16], index: 0, kind: input, shape index: {}]   ;;  %s2344_s1 = inlined_call_operand.hbm [shape: f32[2,8,256], index: 1, kind: input, shape index: {}]   ;;  %s2345_s2 = inlined_call_operand.hbm [shape: f32[16,256], index: 2, kind: input, shape index: {}]   ;;  %s2346_s3 = inlined_call_operand.hbm [shape: f32[9,256], index: 3, kind: input, shape index: {}]   ;;  %s2347_s4 = inlined_call_operand.vmem [shape: bf16[8,72], index: 4, kind: input, shape index: {}]   ;;  %s2348_s5 = inlined_call_operand.vmem [shape: f32[8,1], index: 5, kind: input, shape index: {}]   ;;  %s2349_s6 = inlined_call_operand.vmem [shape: f32[8,1], index: 6, kind: input, shape index: {}]   ;;  %s2350_s7 = inlined_call_operand.vmem [shape: bf16[8,72], index: 7, kind: input, shape index: {}]   ;;  %s2351_s8 = inlined_call_operand.vmem [shape: f32[8,1], index: 8, kind: input, shape index: {}]   ;;  %s2352_s9 = inlined_call_operand.vmem [shape: f32[8,1], index: 9, kind: input, shape index: {}]   ;;  %s2353_s10 = inlined_call_operand.hbm [shape: f32[2,8,256], index: 10, kind: output, shape index: {}]  }
   0x1   :  { %17 = vsyncpa [#allocation5 + $0x1], 0 }
   0x2   :  { %18 = vsyncpa [#allocation8], 0 }
   0x3   :  { %19 = vsyncpa [#allocation6], 0 }
   0x4   :  { %21 = vsyncpa [#allocation6 + $0x1], 0  ;;  %s1871_s13 = smov 0   ;;  %s1873_s14 = smov 0  }
   0x5   :  { %s1875_s15 = smov 0   ;;  %s1877_s16 = smov 0  }
   0x6 LB: > { %2362 = sst [smem:[#allocation14_spill]] %s1786_s13  ;;  %s1892_s17 = sadd.s32 4294967295, %s1798_s16   ;;  %s1798_s16 = sphi %s1877_s16, %s2384_s16   ;;  %s1794_s15 = sphi %s1875_s15, %s2383_s15   ;;  %s1790_s14 = sphi %s1873_s14, %s2382_s14   ;;  %s1786_s13 = sphi %s1871_s13, %s2381_s13  }
   0x7   : > { %s1448_s18 = sadd.s32 4294967294, %s1798_s16   ;;  %p73_p0 = scmp.ne.s32.totalorder %s1790_s14, %s1786_s13 }
   0x8   : > { %p2354_p1 = scmp.eq.s32.totalorder %s1892_s17, 0  ;;  %p271_p3 = scmp.eq.s32.totalorder %s1448_s18, 1 }
   0x9   : > { %p1449_p5 = scmp.ge.s32.totalorder %s1798_s16, 1  ;;  %p278_p7 = scmp.lt.s32.totalorder %s1798_s16, 3 }
   0xa   : > { %p1901_p4 = por %p2354_p1, %p73_p0  ;;  %p1906_p6 = por %p271_p3, %p73_p0 }
   0xb   : > { %p1911_p8 = pnand %p1449_p5, %p278_p7  ;;  %s1800_s22 = smov [#allocation7]  }
   0xc   : > { %s2363_s19 = scalar_select %p1901_p4, 1, 0 }
   0xd   : > { %s2364_s20 = scalar_select %p1906_p6, 1, 0 }
   0xe   : > { %s290_s23 = sshll.u32 %s1800_s22, 4  ;;  %p1493_p9 = pneg %p1911_p8  ;;  %s1915_s23 = int_to_ptr.vmem [resolvable:$true] %s290_s23 }
   0xf   : > { %2365 = sst [smem:[#allocation15_spill]] %s2364_s20  ;;  %s1801_s25 = smov [#allocation9]  }
  0x10   : > { %p1922_p11 = pnand %p1493_p9, %p2354_p1  ;;  %s303_s26 = sshll.u32 %s1801_s25, 4  ;;  %s1926_s26 = int_to_ptr.vmem [resolvable:$true] %s303_s26 }
  0x11   : > { %s1642_s29 = scalar_lea.hbm %s2345_s2, 512 }
  0x12   : > { %p1643_p12 = scmp.ne.s32.totalorder %s2345_s2, %s1642_s29  ;;  %p1644_p13 = pneg %p1922_p11 }
  0x13   : > { %p1649_p5 = scmp.lt.u32.totalorder %s1642_s29, %s2345_s2 }
  0x14   : > { %p1645_p0 = pnand %p1644_p13, %p1643_p12 }
  0x16   : > { %p1646_p3 = pneg %p1645_p0 }
  0x18   : > { %p1651_p7 = pnand %p1649_p5, %p1646_p3 }
  0x1a   : > { %1654 = shalt.err (!%p1651_p7)
}
  0x1b   : > { %s1655_s22 = scalar_lea.vmem %s1915_s23, 512  ;;  %p1663_p2 = scmp.lt.s32.totalorder %s1915_s23, %s1915_s23 }
  0x1c   : > { %p1656_p9 = scmp.ne.s32.totalorder %s1915_s23, %s1655_s22  ;;  %p1664_p12 = scmp.lt.s32.totalorder %s1655_s22, %s1655_s22 }
  0x1e   : > { %p1658_p10 = pnand %p1656_p9, %p1644_p13  ;;  %p1665_p0 = por %p1664_p12, %p1663_p2 }
  0x20   : > { %p1659_p1 = pneg %p1658_p10 }
  0x22   : > { %p1666_p6 = pnand %p1665_p0, %p1659_p1 }
  0x24   : > { %1669 = shalt.err (!%p1666_p6)
}
  0x25   : > { %s1802_s25 = smov 256   ;;  %s1803_s27 = smov 16  }
  0x26   : > { %1496 = dma.hbm_to_vmem [thread:$0]  (!%p1922_p11), %s2345_s2, 512, %s1915_s23, [#allocation8], %s1802_s25, %s1802_s25, %s1803_s27  }
  0x27   : > { %s1670_s12 = scalar_lea.hbm %s2346_s3, 512 }
  0x28   : > { %p1671_p2 = scmp.ne.s32.totalorder %s2346_s3, %s1670_s12  ;;  %p1677_p10 = scmp.lt.u32.totalorder %s1670_s12, %s2346_s3 }
  0x2a   : > { %p1673_p1 = pnand %p1671_p2, %p1644_p13 }
  0x2c   : > { %p1674_p6 = pneg %p1673_p1 }
  0x2e   : > { %p1679_p3 = pnand %p1677_p10, %p1674_p6 }
  0x30   : > { %1682 = shalt.err (!%p1679_p3)
}
  0x31   : > { %s1683_s23 = scalar_lea.vmem %s1926_s26, 512  ;;  %p1691_p12 = scmp.lt.s32.totalorder %s1926_s26, %s1926_s26 }
  0x32   : > { %p1684_p5 = scmp.ne.s32.totalorder %s1926_s26, %s1683_s23  ;;  %p1692_p0 = scmp.lt.s32.totalorder %s1683_s23, %s1683_s23 }
  0x34   : > { %p1686_p7 = pnand %p1684_p5, %p1644_p13  ;;  %p1693_p2 = por %p1692_p0, %p1691_p12 }
  0x36   : > { %p1687_p9 = pneg %p1686_p7 }
  0x38   : > { %p1694_p1 = pnand %p1693_p2, %p1687_p9 }
  0x3a   : > { %1697 = shalt.err (!%p1694_p1)
}
  0x3b   : > { %1499 = dma.hbm_to_vmem [thread:$0]  (!%p1922_p11), %s2346_s3, 512, %s1926_s26, [#allocation8], %s1802_s25, %s1802_s25, %s1803_s27  }
  0x3c   : > { %s1981_s28 = sadd.s32 1, %s1798_s16   ;;  %s60_s24 = sadd.s32 1, %s1794_s15 }
  0x3d   : > { %s57_s29 = ssub.s32 %s1798_s16, %s1981_s28  ;;  %p67_p13 = scmp.ne.s32.totalorder %s1794_s15, %s1790_s14 }
  0x3e   : > { %p58_p6 = scmp.eq.s32.totalorder %s57_s29, 0  ;;  %p68_p10 = scmp.eq.s32.totalorder %s1798_s16, 0 }
  0x3f   : > { %p2368_p3 = scmp.eq.s32.totalorder %s1892_s17, 1  ;;  %p1510_p7 = scmp.lt.s32.totalorder %s1798_s16, 2 }
  0x40   : > { %s1997_s11 = scalar_select %p58_p6, %s1794_s15, %s60_s24  }
  0x41   : > { %p1991_p5 = por %p2368_p3, %p67_p13  ;;  %p69_p9 = por %p68_p10, %p67_p13 }
  0x42   : > { %s343_s12 = sand.u32 1, %s1794_s15   ;;  %s1474_s26 = sshll.u32 %s1798_s16, 8 }
  0x43   : > { %s2369_s30 = scalar_select %p1991_p5, 1, 0 }
  0x44   : > { %s1453_s18 = sshll.u32 %s343_s12, 4  ;;  %s2004_s22 = scalar_lea.hbm %s2344_s1, %s1474_s26 }
  0x45   : > { %s347_s23 = scalar_lea.vmem [#allocation4], %s1453_s18  ;;  %p2008_p11 = pnand %p1510_p7, %p69_p9 }
  0x46   : > { %s355_s13 = sshll.u32 %s347_s23, 4  ;;  %s344_s24 = scalar_lea.sflag [#allocation5], %s343_s12  ;;  %s2006_s13 = int_to_ptr.vmem [resolvable:$true] %s355_s13 }
  0x47   : > { %s1698_s29 = scalar_lea.hbm %s2004_s22, 256  ;;  %p1700_p0 = pneg %p2008_p11 }
  0x48   : > { %p1699_p12 = scmp.ne.s32.totalorder %s2004_s22, %s1698_s29  ;;  %s1703_s25 = scalar_lea.hbm %s2344_s1, 512 }
  0x49   : > { %p1704_p13 = scmp.lt.u32.totalorder %s2004_s22, %s2344_s1  ;;  %p1705_p6 = scmp.lt.u32.totalorder %s1703_s25, %s1698_s29 }
  0x4a   : > { %p1701_p2 = pnand %p1700_p0, %p1699_p12  ;;  %p1707_p3 = scmp.lt.u32.totalorder %s1698_s29, %s2004_s22 }
  0x4b   : > { %p1706_p10 = por %p1705_p6, %p1704_p13 }
  0x4c   : > { %p1702_p1 = pneg %p1701_p2 }
  0x4d   : > { %p1708_p7 = por %p1707_p3, %p1706_p10 }
  0x4f   : > { %p1709_p9 = pnand %p1708_p7, %p1702_p1 }
  0x51   : > { %1712 = shalt.err (!%p1709_p9)
}
  0x52   : > { %s1713_s12 = scalar_lea.vmem %s2006_s13, 256  ;;  %s1804_s26 = smov [#allocation4]  }
  0x53   : > { %p1714_p12 = scmp.ne.s32.totalorder %s2006_s13, %s1713_s12  ;;  %s1718_s18 = sshll.u32 %s1804_s26, 4  ;;  %s1719_s18 = int_to_ptr.vmem [resolvable:$false] %s1718_s18 }
  0x54   : > { %s1720_s27 = scalar_lea.vmem %s1719_s18, 512  ;;  %p1721_p4 = scmp.lt.s32.totalorder %s2006_s13, %s1719_s18 }
  0x55   : > { %p1716_p2 = pnand %p1714_p12, %p1700_p0  ;;  %p1722_p13 = scmp.lt.s32.totalorder %s1720_s27, %s1713_s12 }
  0x57   : > { %p1717_p5 = pneg %p1716_p2  ;;  %p1723_p6 = por %p1722_p13, %p1721_p4 }
  0x59   : > { %p1724_p10 = pnand %p1723_p6, %p1717_p5 }
  0x5b   : > { %1727 = shalt.err (!%p1724_p10)
}
  0x5c   : > { %1503 = dma.hbm_to_vmem [thread:$0]  (!%p2008_p11), %s2004_s22, 256, %s2006_s13, %s344_s24  }
  0x5d   : > { %364 = sbr.rel (%p1911_p8) target bundleno = 1072 (0x430), region = 60  ;;  %s2040_s29 = sand.u32 (!%p1911_p8), 1, %s1790_s14  }
  0x5e   : > { %s2359_s25 = sshll.u32 (!%p1911_p8), %s2040_s29, 4  ;;  %s367_s23 = scalar_lea.sflag (!%p1911_p8), [#allocation5], %s2040_s29 }
  0x5f   : > { %s2046_s12 = scalar_lea.vmem (!%p1911_p8), [#allocation4], %s2359_s25  ;;  %p2371_p4 = scmp.ne.s32.totalorder (!%p1911_p8), %s2363_s19, 0 }
  0x64   : > { %1773 = dma.done.wait (%p2371_p4), %s367_s23, 256  }
  0x65   : > { %1775 = vsyncadd (%p2371_p4), %s367_s23, 4294967040  ;;  %p2372_p5 = scmp.eq.s32.totalorder %s1892_s17, 0 }
  0x67   : > { %1777 = dma.done.wait (%p2372_p5), [#allocation8], 1024   ;;  %p2373_p8 = pmov %p2372_p5 }
  0x68   : > { %p420_p11 = scmp.lt.s32.totalorder %s1892_s17, 1  ;;  %v530_v0 = vlaneseq  ;;  %v1805_v1 = vmov 0.0   ;;  %v429_v4 = vld [vmem:[#allocation7 + $0x8] sm:$0xff]  ;;  %v431_v5 = vld [vmem:[#allocation7 + $0x18] sm:$0xff]  ;;  %v428_v6 = vld [vmem:[#allocation7] sm:$0xff]  ;;  %vm432_vm0 = vcmask 130048  }
  0x69   : > { %1779 = vsyncadd (%p2373_p8), [#allocation8], 4294966272  ;;  %503 = vmatprep.mubr.f32.mxu0 %v1805_v1  ;;  %v1477_v8 = vpack.c.bf16 %v431_v5, %v429_v4  ;;  %v430_v9 = vld [vmem:[#allocation7 + $0x10] sm:$0xff]  ;;  %v567_v10 = vld [vmem:[#allocation9 + $0x1] ss:$8 sm:$0x3] }
  0x6a   : > { %s421_s21 = scalar_select %p420_p11, %s1892_s17, 1  ;;  %v531_v2 = vshrl.u32 %v530_v0, 7  ;;  %v1479_v11 = vpack.c.bf16 %v430_v9, %v428_v6  ;;  %v528_v13 = vld [vmem:[#allocation9] ss:$8 sm:$0x3]  ;;  %vm581_vm1 = vcmask 916480  }
  0x6b   : > { %1478 = vmatprep.subr.bf16.mxu0 %v1477_v8  ;;  %s1806_s24 = smov 112   ;;  %s1807_s26 = smov 111   ;;  %v605_v18 = vld [vmem:[#allocation9 + $0x2] ss:$8 sm:$0x3]  ;;  %vm542_vm2 = vcmask 908288  }
  0x6c   : > { %s1475_s22 = sshll.u32 %s421_s21, 4  ;;  %v2058_v3 = vsub.s32 0, %v531_v2  ;;  %v2060_v7 = vsub.s32 1, %v531_v2  ;;  %1480 = vmatpush1.bf16.msra.mxu0 %v1479_v11  ;;  %v644_v21 = vld [vmem:[#allocation9 + $0x3] ss:$8 sm:$0x3] }
  0x6d   : > { %s2065_s20 = scalar_lea.vmem %s2343_s0, %s1475_s22  ;;  %s1808_s18 = smov 113   ;;  %v685_v24 = vld [vmem:[#allocation9 + $0x5] ss:$8 sm:$0x3]  ;;  %vm619_vm3 = vcmask 924672   ;;  %vm658_vm4 = vcmask 1039360  }
  0x6e   : > { %v572_v12 = vrot.slane %v567_v10, %v2058_v3  ;;  %v533_v14 = vrot.slane %v528_v13, %v2058_v3  ;;  %v426_v15 = vld [vmem:[%s2065_s20] sm:$0xff]  ;;  %v576_v16 = vrot.slane %v567_v10, %v2060_v7  ;;  %v537_v17 = vrot.slane %v528_v13, %v2060_v7  ;;  %s1809_s27 = smov 127   ;;  %s1810_s23 = smov 1   ;;  %v796_v33 = vld [vmem:[#allocation9 + $0x10] ss:$8 sm:$0x3] }
  0x6f   : > { %1463 = vmatmul.mubr.msk.f32.vlgmr.msra.gmra.mrb[0].mxu0 %vm432_vm0, %v426_v15  ;;  %v614_v19 = vrot.slane %v605_v18, %v2060_v7  ;;  %v610_v20 = vrot.slane %v605_v18, %v2058_v3  ;;  %v653_v22 = vrot.slane %v644_v21, %v2060_v7  ;;  %v649_v23 = vrot.slane %v644_v21, %v2058_v3  ;;  %v722_v27 = vld [vmem:[#allocation9 + $0x6] ss:$8 sm:$0x3]  ;;  %v759_v30 = vld [vmem:[#allocation9 + $0x7] ss:$8 sm:$0x3] }
  0x70   : > { %577 = vrot.lane.b32.xlu1 %v572_v12, %s1806_s24  ;;  %538 = vrot.lane.b32.xlu0 %v533_v14, %s1807_s26  ;;  %v694_v25 = vrot.slane %v685_v24, %v2060_v7  ;;  %v690_v26 = vrot.slane %v685_v24, %v2058_v3  ;;  %v731_v28 = vrot.slane %v722_v27, %v2060_v7  ;;  %s1811_s21 = smov 15   ;;  %s1812_s22 = smov 16   ;;  %v2106_v50 = vld [vmem:[%s2046_s12] sm:$0xff]  ;;  %v2109_v51 = vld [vmem:[%s2046_s12 + $0x8] sm:$0xff]  ;;  %vm675_vm5 = vcmask 7168  }
  0x71   : > { %509 = vmatprep.mubr.f32.mxu0 %v1805_v1  ;;  %v727_v29 = vrot.slane %v722_v27, %v2058_v3  ;;  %v768_v31 = vrot.slane %v759_v30, %v2060_v7  ;;  %v764_v32 = vrot.slane %v759_v30, %v2058_v3  ;;  %v805_v34 = vrot.slane %v796_v33, %v2060_v7  ;;  %s2360_s19 = smov 17   ;;  %s2374_s25 = smov 17  }
  0x72   : > { %v801_v35 = vrot.slane %v796_v33, %v2058_v3  ;;  %vm636_vm6 = vcmask 121856   ;;  %vm559_vm7 = vcmask 138240   ;;  %vm865_vm8 = vcmask 1043456   ;;  %s2375_s12 = sshll.u32 %s2040_s29, 4  ;;  %p2376_p1 = scmp.ne.s32.totalorder %s2369_s30, 0 }
  0x73   : > { %vm861_vm9 = vcmask 588800   ;;  %s419_s13 = scalar_lea.vmem [#allocation10], %s2375_s12 }
  0x74   : > { %579 = vrot.lane.b32.xlu1 %v576_v16, %s1806_s24  ;;  %540 = vrot.lane.b32.xlu0 %v537_v17, %s1807_s26 }
  0x78   : > { %617 = vrot.lane.b32.xlu1 %v614_v19, %s1808_s18  ;;  %615 = vrot.lane.b32.xlu0 %v610_v20, %s1808_s18 }
  0x7c   : > { %656 = vrot.lane.b32.xlu1 %v653_v22, %s1809_s27  ;;  %654 = vrot.lane.b32.xlu0 %v649_v23, %s1809_s27 }
  0x80   : > { %697 = vrot.lane.b32.xlu1 %v694_v25, %s1810_s23  ;;  %695 = vrot.lane.b32.xlu0 %v690_v26, %s1810_s23 }
  0x84   : > { %734 = vrot.lane.b32.xlu1 %v731_v28, %s1811_s21  ;;  %732 = vrot.lane.b32.xlu0 %v727_v29, %s1811_s21 }
  0x88   : > { %771 = vrot.lane.b32.xlu1 %v768_v31, %s1812_s22  ;;  %769 = vrot.lane.b32.xlu0 %v764_v32, %s1812_s22 }
  0x8c   : > { %808 = vrot.lane.b32.xlu1 %v805_v34, %s2360_s19  ;;  %806 = vrot.lane.b32.xlu0 %v801_v35, %s2360_s19  ;;  %v1814_v34 = vmov 0   ;;  %v427_v35 = vld [vmem:[%s2065_s20 + $0x8] sm:$0xff] }
  0x8d   : > { %904 = vmatprep.mubr.bf16.mxu1 %v1814_v34  ;;  %1601 = vset.pattern.permute.xlu1 %v1814_v34 }
  0x8e   : > { %1600 = vset.pattern.permute.xlu0 %v1814_v34  ;;  %1464 = vmatmul.mubr.msk.f32.gmra.mrb[2].mxu0 %vm432_vm0, %v427_v35 }
  0x8f   : > { %1301 = vmatprep.mubr.bf16.mxu0 %v1814_v34 }
  0xe2   : > { %v578_v36 = vpop.permute.xlu1 %577  ;;  %v539_v38 = vpop.permute.xlu0 %538 }
  0xe3   : > { %v586_v37 = vmul.f32 0.0, %v578_v36  ;;  %v547_v39 = vmul.f32 0.0, %v539_v38 }
  0xe5   : > { %592 = vrot.lane.b32.xlu1 %v586_v37, %s1812_s22  ;;  %553 = vrot.lane.b32.xlu0 %v547_v39, %s2360_s19  ;;  %v913_v39 = vld [vmem:[%s2348_s5] sm:$0xff] }
  0xe6   : > { %v541_v40 = vpop.permute.xlu0 %540  ;;  %v580_v45 = vpop.permute.xlu1 %579 }
  0xe7   : > { %v582_v57 = vsel %vm581_vm1, %v578_v36, %v580_v45  ;;  %v543_v59 = vsel %vm542_vm2, %v539_v38, %v541_v40  ;;  %v921_v38 = vld [vmem:[%s2349_s6] sm:$0xff] }
  0xea   : > { %v616_v41 = vpop.permute.xlu0 %615  ;;  %v618_v46 = vpop.permute.xlu1 %617 }
  0xeb   : > { %v624_v42 = vmul.f32 0.0, %v616_v41  ;;  %v620_v2 = vsel %vm619_vm3, %v616_v41, %v618_v46 }
  0xed   : > { %630 = vrot.lane.b32.xlu0 %v624_v42, %s1811_s21 }
  0xee   : > { %v655_v43 = vpop.permute.xlu0 %654  ;;  %v657_v47 = vpop.permute.xlu1 %656 }
  0xef   : > { %v663_v44 = vmul.f32 0.0, %v655_v43  ;;  %v659_v4 = vsel %vm658_vm4, %v655_v43, %v657_v47  ;;  %v977_v43 = vld [vmem:[#allocation9 + $0x1] ss:$8 sm:$0x3] }
  0xf1   : > { %669 = vrot.lane.b32.xlu1 %v663_v44, %s1810_s23  ;;  %v982_v44 = vrot.slane %v977_v43, %v2058_v3 }
  0xf2   : > { %v698_v48 = vpop.permute.xlu1 %697  ;;  %v696_v49 = vpop.permute.xlu0 %695 }
  0xf3   : > { %v699_v14 = vsel %vm675_vm5, %v696_v49, %v698_v48  ;;  %v705_v15 = vmul.f32 0.0, %v698_v48 }
  0xf6   : > { %v735_v52 = vpop.permute.xlu1 %734  ;;  %v733_v54 = vpop.permute.xlu0 %732 }
  0xf7   : > { %v736_v19 = vsel %vm636_vm6, %v733_v54, %v735_v52  ;;  %v742_v23 = vmul.f32 0.0, %v735_v52 }
  0xfa   : > { %v772_v8 = vpop.permute.xlu1 %771  ;;  %v770_v9 = vpop.permute.xlu0 %769 }
  0xfb   : > { %v773_v20 = vsel %vm432_vm0, %v770_v9, %v772_v8  ;;  %v779_v24 = vmul.f32 0.0, %v772_v8 }
  0xfe   : > { %v809_v21 = vpop.permute.xlu1 %808  ;;  %v807_v22 = vpop.permute.xlu0 %806 }
  0xff   : > { %v810_v29 = vsel %vm559_vm7, %v807_v22, %v809_v21  ;;  %v816_v36 = vmul.f32 0.0, %v809_v21 }
 0x142   : > { %v505_v53 = vpop.f32.mrb[0].mxu0 }
 0x143   : > { %v2112_v55 = vmul.f32 %v2106_v50, %v505_v53  ;;  %v507_v56 = vpop.f32.mrb[1].mxu0 }
 0x144   : > { %v2116_v58 = vmul.f32 %v2109_v51, %v507_v56 }
 0x145   : > { %v740_v60 = vmul.f32 %v733_v54, %v2112_v55  ;;  %v703_v61 = vmul.f32 %v696_v49, %v2112_v55  ;;  %v587_v62 = vmul.f32 %v582_v57, %v2112_v55  ;;  %v548_v0 = vmul.f32 %v543_v59, %v2112_v55  ;;  %v1049_v49 = vld [vmem:[#allocation9 + $0x3] ss:$8 sm:$0x3]  ;;  %v1087_v54 = vld [vmem:[#allocation9 + $0x5] ss:$8 sm:$0x3] }
 0x146   : > { %v588_v63 = vmul.f32 %v580_v45, %v2116_v58  ;;  %v549_v1 = vmul.f32 %v541_v40, %v2116_v58  ;;  %v664_v10 = vmul.f32 %v659_v4, %v2112_v55  ;;  %v665_v11 = vmul.f32 %v657_v47, %v2116_v58  ;;  %v941_v40 = vld [vmem:[#allocation9] ss:$8 sm:$0x3]  ;;  %v1123_v59 = vld [vmem:[#allocation9 + $0x6] ss:$8 sm:$0x3] }
 0x147   : > { %746 = vrot.lane.b32.xlu0 %v740_v60, %s1808_s18  ;;  %709 = vrot.lane.b32.xlu1 %v703_v61, %s1809_s27  ;;  %v625_v12 = vmul.f32 %v620_v2, %v2112_v55  ;;  %v626_v13 = vmul.f32 %v618_v46, %v2116_v58  ;;  %v704_v18 = vmul.f32 %v699_v14, %v2116_v58  ;;  %v1013_v46 = vld [vmem:[#allocation9 + $0x2] ss:$8 sm:$0x3] }
 0x148   : > { %v1565_v5 = vpack.i.bf16 %v588_v63, %v587_v62  ;;  %v1560_v6 = vpack.i.bf16 %v549_v1, %v548_v0  ;;  %v1575_v16 = vpack.i.bf16 %v665_v11, %v664_v10  ;;  %v777_v25 = vmul.f32 %v770_v9, %v2112_v55  ;;  %v1159_v62 = vld [vmem:[#allocation9 + $0x7] ss:$8 sm:$0x3]  ;;  %v1195_v1 = vld [vmem:[#allocation9 + $0x10] ss:$8 sm:$0x3] }
 0x149   : > { %v1570_v17 = vpack.i.bf16 %v626_v13, %v625_v12  ;;  %v1580_v26 = vpack.i.bf16 %v705_v15, %v704_v18  ;;  %v778_v27 = vmul.f32 %v773_v20, %v2116_v58  ;;  %v741_v28 = vmul.f32 %v736_v19, %v2116_v58 }
 0x14a   : > { %v814_v30 = vmul.f32 %v807_v22, %v2112_v55  ;;  %v815_v31 = vmul.f32 %v810_v29, %v2116_v58  ;;  %v946_v41 = vrot.slane %v941_v40, %v2058_v3  ;;  %v950_v42 = vrot.slane %v941_v40, %v2060_v7 }
 0x14b   : > { %1566 = vrot.lane.b32.xlu1 %v1565_v5, %s1812_s22  ;;  %1561 = vrot.lane.b32.xlu0 %v1560_v6, %s2360_s19  ;;  %v1590_v32 = vpack.i.bf16 %v779_v24, %v778_v27  ;;  %v1585_v33 = vpack.i.bf16 %v742_v23, %v741_v28  ;;  %v986_v45 = vrot.slane %v977_v43, %v2060_v7 }
 0x14c   : > { %v1595_v37 = vpack.i.bf16 %v815_v31, %v814_v30  ;;  %v1018_v47 = vrot.slane %v1013_v46, %v2058_v3  ;;  %v1022_v48 = vrot.slane %v1013_v46, %v2060_v7  ;;  %v1054_v52 = vrot.slane %v1049_v49, %v2058_v3 }
 0x14d   : > { %v1058_v53 = vrot.slane %v1049_v49, %v2060_v7  ;;  %v1092_v56 = vrot.slane %v1087_v54, %v2058_v3  ;;  %v1096_v57 = vrot.slane %v1087_v54, %v2060_v7  ;;  %v1128_v60 = vrot.slane %v1123_v59, %v2058_v3 }
 0x14e   : > { %v1132_v61 = vrot.slane %v1123_v59, %v2060_v7  ;;  %v1164_v63 = vrot.slane %v1159_v62, %v2058_v3  ;;  %v1168_v0 = vrot.slane %v1159_v62, %v2060_v7  ;;  %v1200_v2 = vrot.slane %v1195_v1, %v2058_v3 }
 0x14f   : > { %1576 = vrot.lane.b32.xlu1 %v1575_v16, %s1810_s23  ;;  %1571 = vrot.lane.b32.xlu0 %v1570_v17, %s1811_s21  ;;  %v1204_v4 = vrot.slane %v1195_v1, %v2060_v7  ;;  %v832_v1 = vld [vmem:[%s2347_s4] sm:$0xf] }
 0x153   : > { %783 = vrot.lane.b32.xlu1 %v777_v25, %s1806_s24  ;;  %1581 = vrot.lane.b32.xlu0 %v1580_v26, %s1809_s27 }
 0x157   : > { %1591 = vrot.lane.b32.xlu1 %v1590_v32, %s1806_s24  ;;  %1586 = vrot.lane.b32.xlu0 %v1585_v33, %s1808_s18  ;;  %v593_v5 = vpop.permute.xlu1 %592  ;;  %v554_v6 = vpop.permute.xlu0 %553 }
 0x15b   : > { %824 = vrot.lane.b32.xlu1 %v816_v36, %s1807_s26  ;;  %1596 = vrot.lane.b32.xlu0 %v1595_v37, %s1807_s26 }
 0x15f   : > { %924 = vperm.xlu1 %1601, %v921_v38   ;;  %916 = vperm.xlu0 %1600, %v913_v39   ;;  %v631_v8 = vpop.permute.xlu0 %630 }
 0x163   : > { %951 = vrot.lane.b32.xlu1 %v946_v41, %s1807_s26  ;;  %953 = vrot.lane.b32.xlu0 %v950_v42, %s1807_s26  ;;  %v670_v9 = vpop.permute.xlu1 %669 }
 0x167   : > { %987 = vrot.lane.b32.xlu1 %v982_v44, %s1806_s24  ;;  %989 = vrot.lane.b32.xlu0 %v986_v45, %s1806_s24 }
 0x16b   : > { %1023 = vrot.lane.b32.xlu1 %v1018_v47, %s1808_s18  ;;  %1025 = vrot.lane.b32.xlu0 %v1022_v48, %s1808_s18 }
 0x16f   : > { %1059 = vrot.lane.b32.xlu1 %v1054_v52, %s1809_s27  ;;  %1061 = vrot.lane.b32.xlu0 %v1058_v53, %s1809_s27 }
 0x173   : > { %1097 = vrot.lane.b32.xlu1 %v1092_v56, %s1810_s23  ;;  %1099 = vrot.lane.b32.xlu0 %v1096_v57, %s1810_s23 }
 0x177   : > { %1133 = vrot.lane.b32.xlu1 %v1128_v60, %s1811_s21  ;;  %1135 = vrot.lane.b32.xlu0 %v1132_v61, %s1811_s21 }
 0x17b   : > { %1169 = vrot.lane.b32.xlu1 %v1164_v63, %s1812_s22  ;;  %1171 = vrot.lane.b32.xlu0 %v1168_v0, %s1812_s22 }
 0x17f   : > { %1205 = vrot.lane.b32.xlu1 %v1200_v2, %s2374_s25  ;;  %1207 = vrot.lane.b32.xlu0 %v1204_v4, %s2374_s25 }
 0x1b9   : > { %v747_v10 = vpop.permute.xlu0 %746  ;;  %v710_v11 = vpop.permute.xlu1 %709 }
 0x1bd   : > { %v1567_v12 = vpop.permute.xlu1 %1566  ;;  %v1562_v13 = vpop.permute.xlu0 %1561 }
 0x1be   : > { %v1569_v14 = vunpack.i.h.bf16 %v1567_v12  ;;  %v1568_v15 = vunpack.i.l.bf16 %v1567_v12  ;;  %v1564_v16 = vunpack.i.h.bf16 %v1562_v13  ;;  %v1563_v17 = vunpack.i.l.bf16 %v1562_v13  ;;  %v511_v13 = vpop.f32.mrb[2].mxu0 }
 0x1c0   : > { %v561_v3 = vsel %vm559_vm7, %v1563_v17, %v1564_v16  ;;  %v599_v7 = vsel %vm432_vm0, %v1568_v15, %v1569_v14  ;;  %v560_v18 = vsel %vm559_vm7, %v554_v6, %v1563_v17  ;;  %v598_v19 = vsel %vm432_vm0, %v593_v5, %v1568_v15  ;;  %v513_v14 = vpop.f32.mrb[3].mxu0 }
 0x1c1   : > { %v1577_v20 = vpop.permute.xlu1 %1576  ;;  %v1572_v21 = vpop.permute.xlu0 %1571  ;;  %v852_v22 = vpack.c.bf16 %v599_v7, %v561_v3  ;;  %v851_v23 = vpack.c.bf16 %v598_v19, %v560_v18 }
 0x1c2   : > { %v1579_v24 = vunpack.i.h.bf16 %v1577_v20  ;;  %v1578_v25 = vunpack.i.l.bf16 %v1577_v20  ;;  %v1574_v26 = vunpack.i.h.bf16 %v1572_v21  ;;  %v1573_v27 = vunpack.i.l.bf16 %v1572_v21 }
 0x1c3   : > { %872 = vmatprep.subr.bf16.mxu1 %v852_v22 }
 0x1c4   : > { %873 = vmatpush1.bf16.msra.mxu1 %v851_v23  ;;  %v638_v28 = vsel %vm636_vm6, %v1573_v27, %v1574_v26  ;;  %v677_v29 = vsel %vm675_vm5, %v1578_v25, %v1579_v24  ;;  %v637_v30 = vsel %vm636_vm6, %v631_v8, %v1573_v27  ;;  %v676_v31 = vsel %vm675_vm5, %v670_v9, %v1578_v25 }
 0x1c5   : > { %v784_v32 = vpop.permute.xlu1 %783  ;;  %v1582_v33 = vpop.permute.xlu0 %1581  ;;  %v854_v34 = vpack.c.bf16 %v677_v29, %v638_v28  ;;  %v853_v35 = vpack.c.bf16 %v676_v31, %v637_v30 }
 0x1c6   : > { %v1584_v36 = vunpack.i.h.bf16 %v1582_v33  ;;  %v1583_v37 = vunpack.i.l.bf16 %v1582_v33 }
 0x1c7   : > { %874 = vmatprep.subr.bf16.mxu1 %v854_v34 }
 0x1c8   : > { %875 = vmatpush1.bf16.msra.mxu1 %v853_v35  ;;  %v716_v38 = vsel %vm658_vm4, %v1583_v37, %v1584_v36  ;;  %v715_v39 = vsel %vm658_vm4, %v710_v11, %v1583_v37 }
 0x1c9   : > { %v1592_v40 = vpop.permute.xlu1 %1591  ;;  %v1587_v41 = vpop.permute.xlu0 %1586  ;;  %v856_v42 = vpack.c.bf16 %v716_v38, %v2116_v58  ;;  %v855_v43 = vpack.c.bf16 %v715_v39, %v2112_v55 }
 0x1ca   : > { %v1594_v44 = vunpack.i.h.bf16 %v1592_v40  ;;  %v1593_v45 = vunpack.i.l.bf16 %v1592_v40  ;;  %v1589_v46 = vunpack.i.h.bf16 %v1587_v41  ;;  %v1588_v47 = vunpack.i.l.bf16 %v1587_v41 }
 0x1cb   : > { %876 = vmatprep.subr.bf16.mxu1 %v856_v42 }
 0x1cc   : > { %877 = vmatpush1.bf16.msra.mxu1 %v855_v43  ;;  %v753_v48 = vsel %vm619_vm3, %v1588_v47, %v1589_v46  ;;  %v790_v49 = vsel %vm581_vm1, %v1593_v45, %v1594_v44  ;;  %v752_v52 = vsel %vm619_vm3, %v747_v10, %v1588_v47  ;;  %v789_v53 = vsel %vm581_vm1, %v784_v32, %v1593_v45 }
 0x1cd   : > { %v1597_v54 = vpop.permute.xlu0 %1596  ;;  %v858_v56 = vpack.c.bf16 %v790_v49, %v753_v48  ;;  %v857_v57 = vpack.c.bf16 %v789_v53, %v752_v52  ;;  %v825_v55 = vpop.permute.xlu1 %824 }
 0x1ce   : > { %v1599_v58 = vunpack.i.h.bf16 %v1597_v54  ;;  %v1598_v59 = vunpack.i.l.bf16 %v1597_v54 }
 0x1cf   : > { %878 = vmatprep.subr.bf16.mxu1 %v858_v56 }
 0x1d0   : > { %v827_v60 = vsel %vm542_vm2, %v1599_v58, %v825_v55  ;;  %879 = vmatpush1.bf16.msra.mxu1 %v857_v57  ;;  %v826_v61 = vsel %vm542_vm2, %v1598_v59, %v1599_v58 }
 0x1d1   : > { %v860_v62 = vpack.c.bf16 %v827_v60, %v827_v60  ;;  %v859_v63 = vpack.c.bf16 %v826_v61, %v826_v61 }
 0x1d3   : > { %1465 = vmatprep.subr.msk.bf16.mxu1 %vm865_vm8, %v860_v62  ;;  %v867_v0 = vsel %vm865_vm8, %v859_v63, 0 }
 0x1d4   : > { %881 = vmatpush1.bf16.msra.mxu1 %v867_v0 }
 0x1d7   : > { %1466 = vmatmul.mubr.msk.bf16.vlgmr.msra.gmra.mrb[0].mxu1 %vm861_vm9, %v832_v1 }
 0x1de   : > { %v925_v2 = vpop.permute.xlu1 %924  ;;  %v917_v15 = vpop.permute.xlu0 %916 }
 0x1e2   : > { %v952_v4 = vpop.permute.xlu1 %951  ;;  %v954_v16 = vpop.permute.xlu0 %953 }
 0x1e3   : > { %v959_v5 = vmul.f32 0.0, %v952_v4  ;;  %v955_v35 = vsel %vm542_vm2, %v952_v4, %v954_v16 }
 0x1e5   : > { %965 = vrot.lane.b32.xlu1 %v959_v5, %s2374_s25 }
 0x1e6   : > { %v988_v6 = vpop.permute.xlu1 %987  ;;  %v990_v17 = vpop.permute.xlu0 %989 }
 0x1e7   : > { %v995_v8 = vmul.f32 0.0, %v988_v6  ;;  %v991_v33 = vsel %vm581_vm1, %v988_v6, %v990_v17 }
 0x1e9   : > { %1001 = vrot.lane.b32.xlu0 %v995_v8, %s1812_s22 }
 0x1ea   : > { %v1024_v9 = vpop.permute.xlu1 %1023  ;;  %v1026_v3 = vpop.permute.xlu0 %1025 }
 0x1eb   : > { %v1031_v10 = vmul.f32 0.0, %v1024_v9  ;;  %v1027_v42 = vsel %vm619_vm3, %v1024_v9, %v1026_v3 }
 0x1ed   : > { %1037 = vrot.lane.b32.xlu1 %v1031_v10, %s1811_s21 }
 0x1ee   : > { %v1060_v11 = vpop.permute.xlu1 %1059  ;;  %v1062_v7 = vpop.permute.xlu0 %1061 }
 0x1ef   : > { %v1067_v12 = vmul.f32 0.0, %v1060_v11  ;;  %v1063_v43 = vsel %vm658_vm4, %v1060_v11, %v1062_v7 }
 0x1f1   : > { %1073 = vrot.lane.b32.xlu0 %v1067_v12, %s1810_s23 }
 0x1f2   : > { %v1098_v18 = vpop.permute.xlu1 %1097  ;;  %v1100_v20 = vpop.permute.xlu0 %1099 }
 0x1f3   : > { %v1101_v54 = vsel %vm675_vm5, %v1098_v18, %v1100_v20  ;;  %v1107_v56 = vmul.f32 0.0, %v1100_v20 }
 0x1f6   : > { %v1134_v30 = vpop.permute.xlu1 %1133  ;;  %v1136_v31 = vpop.permute.xlu0 %1135 }
 0x1f7   : > { %v1137_v55 = vsel %vm636_vm6, %v1134_v30, %v1136_v31  ;;  %v1143_v63 = vmul.f32 0.0, %v1136_v31 }
 0x1fa   : > { %v1170_v46 = vpop.permute.xlu1 %1169  ;;  %v1172_v47 = vpop.permute.xlu0 %1171 }
 0x1fb   : > { %v1173_v60 = vsel %vm432_vm0, %v1170_v46, %v1172_v47  ;;  %v1179_v0 = vmul.f32 0.0, %v1172_v47 }
 0x1fe   : > { %v1206_v61 = vpop.permute.xlu1 %1205  ;;  %v1208_v62 = vpop.permute.xlu0 %1207 }
 0x1ff   : > { %v1209_v6 = vsel %vm559_vm7, %v1206_v61, %v1208_v62  ;;  %v1215_v12 = vmul.f32 0.0, %v1208_v62 }
 0x2aa   : > { %v906_v19 = vpop.f32.mrb[0].mxu1 }
 0x2ab   : > { %v919_v21 = vmul.f32 %v917_v15, %v906_v19  ;;  %v908_v22 = vpop.f32.mrb[1].mxu1 }
 0x2ac   : > { %v920_v23 = vmul.f32 %v917_v15, %v908_v22  ;;  %v910_v24 = vpop.f32.mrb[2].mxu1  ;;  %v1310_v15 = vld [vmem:[%s2351_s8] sm:$0xff] }
 0x2ad   : > { %v927_v25 = vadd.f32 %v925_v2, %v919_v21  ;;  %v911_v26 = vpop.f32.mrb[3].mxu1 }
 0x2ae   : > { %v928_v27 = vadd.f32 %v925_v2, %v920_v23 }
 0x2af   : > { %v929_v28 = vmax.f32 %v927_v25, 0.0 }
 0x2b0   : > { %v930_v29 = vmax.f32 %v928_v27, 0.0 }
 0x2b1   : > { %v2221_v32 = vmul.f32 %v929_v28, %v511_v13 }
 0x2b2   : > { %v2224_v34 = vmul.f32 %v930_v29, %v513_v14  ;;  %v1318_v14 = vld [vmem:[%s2352_s9] sm:$0xff] }
 0x2b3   : > { %v1141_v36 = vmul.f32 %v1134_v30, %v2221_v32  ;;  %v1105_v37 = vmul.f32 %v1098_v18, %v2221_v32  ;;  %v996_v38 = vmul.f32 %v991_v33, %v2221_v32  ;;  %v960_v40 = vmul.f32 %v955_v35, %v2221_v32 }
 0x2b4   : > { %v997_v39 = vmul.f32 %v990_v17, %v2224_v34  ;;  %v961_v41 = vmul.f32 %v954_v16, %v2224_v34  ;;  %v1068_v48 = vmul.f32 %v1063_v43, %v2221_v32  ;;  %v1069_v49 = vmul.f32 %v1062_v7, %v2224_v34  ;;  %v966_v16 = vpop.permute.xlu1 %965  ;;  %v1002_v17 = vpop.permute.xlu0 %1001 }
 0x2b5   : > { %1147 = vrot.lane.b32.xlu1 %v1141_v36, %s1808_s18  ;;  %1111 = vrot.lane.b32.xlu0 %v1105_v37, %s1809_s27  ;;  %v1032_v52 = vmul.f32 %v1027_v42, %v2221_v32  ;;  %v1033_v53 = vmul.f32 %v1026_v3, %v2224_v34  ;;  %v1106_v59 = vmul.f32 %v1101_v54, %v2224_v34 }
 0x2b6   : > { %v1607_v44 = vpack.i.bf16 %v997_v39, %v996_v38  ;;  %v1602_v45 = vpack.i.bf16 %v961_v41, %v960_v40  ;;  %v1617_v57 = vpack.i.bf16 %v1069_v49, %v1068_v48  ;;  %v1177_v1 = vmul.f32 %v1170_v46, %v2221_v32 }
 0x2b7   : > { %v1612_v58 = vpack.i.bf16 %v1033_v53, %v1032_v52  ;;  %v1622_v2 = vpack.i.bf16 %v1107_v56, %v1106_v59  ;;  %v1178_v4 = vmul.f32 %v1173_v60, %v2224_v34  ;;  %v1142_v5 = vmul.f32 %v1137_v55, %v2224_v34 }
 0x2b8   : > { %v1213_v8 = vmul.f32 %v1206_v61, %v2221_v32  ;;  %v1214_v9 = vmul.f32 %v1209_v6, %v2224_v34  ;;  %v1038_v3 = vpop.permute.xlu1 %1037  ;;  %v1074_v7 = vpop.permute.xlu0 %1073 }
 0x2b9   : > { %1608 = vrot.lane.b32.xlu0 %v1607_v44, %s1812_s22  ;;  %1603 = vrot.lane.b32.xlu1 %v1602_v45, %s2374_s25  ;;  %v1632_v10 = vpack.i.bf16 %v1179_v0, %v1178_v4  ;;  %v1627_v11 = vpack.i.bf16 %v1143_v63, %v1142_v5  ;;  %s1347_s25 = sshll.u32 %s419_s13, 4  ;;  %s2301_s25 = int_to_ptr.vmem [resolvable:$true] %s1347_s25 }
 0x2ba   : > { %v1637_v13 = vpack.i.bf16 %v1214_v9, %v1213_v8 }
 0x2bd   : > { %1618 = vrot.lane.b32.xlu0 %v1617_v57, %s1810_s23  ;;  %1613 = vrot.lane.b32.xlu1 %v1612_v58, %s1811_s21  ;;  %s1728_s21 = scalar_lea.vmem %s2301_s25, 256 }
 0x2be   : > { %p1729_p0 = scmp.ne.s32.totalorder %s2301_s25, %s1728_s21 }
 0x2c0   : > { %p1730_p3 = pnand %p1729_p0, %p2376_p1 }
 0x2c1   : > { %1183 = vrot.lane.b32.xlu0 %v1177_v1, %s1806_s24  ;;  %1623 = vrot.lane.b32.xlu1 %v1622_v2, %s1809_s27  ;;  %s1815_s27 = smov [#allocation10]  }
 0x2c2   : > { %p1731_p7 = pneg %p1730_p3  ;;  %s1732_s22 = sshll.u32 %s1815_s27, 4  ;;  %s1733_s22 = int_to_ptr.vmem [resolvable:$false] %s1732_s22 }
 0x2c3   : > { %p1735_p9 = scmp.lt.s32.totalorder %s2301_s25, %s1733_s22 }
 0x2c5   : > { %1633 = vrot.lane.b32.xlu0 %v1632_v10, %s1806_s24  ;;  %1628 = vrot.lane.b32.xlu1 %v1627_v11, %s1808_s18  ;;  %s1476_s18 = sshll.u32 %s1892_s17, 8  ;;  %s1333_s17 = scalar_lea.sflag [#allocation6], %s2040_s29 }
 0x2c6   : > { %s2299_s23 = scalar_lea.hbm %s2353_s10, %s1476_s18  ;;  %s1734_s24 = scalar_lea.vmem %s1733_s22, 512 }
 0x2c7   : > { %p1736_p12 = scmp.lt.s32.totalorder %s1734_s24, %s1728_s21 }
 0x2c9   : > { %1223 = vrot.lane.b32.xlu0 %v1215_v12, %s1807_s26  ;;  %1638 = vrot.lane.b32.xlu1 %v1637_v13, %s1807_s26  ;;  %v1231_v13 = vld [vmem:[%s2350_s7] sm:$0xf]  ;;  %p1737_p2 = por %p1736_p12, %p1735_p9 }
 0x2cb   : > { %p1738_p13 = pnand %p1737_p2, %p1731_p7 }
 0x2cd   : > { %1321 = vperm.xlu0 %1600, %v1318_v14   ;;  %1313 = vperm.xlu1 %1601, %v1310_v15  }
 0x327   : > { %v1148_v18 = vpop.permute.xlu1 %1147  ;;  %v1112_v19 = vpop.permute.xlu0 %1111 }
 0x32b   : > { %v1609_v20 = vpop.permute.xlu0 %1608  ;;  %v1604_v21 = vpop.permute.xlu1 %1603 }
 0x32c   : > { %v1611_v22 = vunpack.i.h.bf16 %v1609_v20  ;;  %v1610_v23 = vunpack.i.l.bf16 %v1609_v20  ;;  %v1606_v24 = vunpack.i.h.bf16 %v1604_v21  ;;  %v1605_v25 = vunpack.i.l.bf16 %v1604_v21 }
 0x32e   : > { %v1007_v26 = vsel %vm432_vm0, %v1002_v17, %v1610_v23  ;;  %v971_v27 = vsel %vm559_vm7, %v966_v16, %v1605_v25  ;;  %v972_v28 = vsel %vm559_vm7, %v1605_v25, %v1606_v24  ;;  %v1008_v29 = vsel %vm432_vm0, %v1610_v23, %v1611_v22 }
 0x32f   : > { %v1250_v30 = vpack.c.bf16 %v1007_v26, %v971_v27  ;;  %v1619_v31 = vpop.permute.xlu0 %1618  ;;  %v1614_v33 = vpop.permute.xlu1 %1613  ;;  %v1251_v35 = vpack.c.bf16 %v1008_v29, %v972_v28 }
 0x330   : > { %v1621_v36 = vunpack.i.h.bf16 %v1619_v31  ;;  %v1620_v37 = vunpack.i.l.bf16 %v1619_v31  ;;  %v1616_v38 = vunpack.i.h.bf16 %v1614_v33  ;;  %v1615_v39 = vunpack.i.l.bf16 %v1614_v33 }
 0x331   : > { %1269 = vmatprep.subr.bf16.mxu0 %v1251_v35 }
 0x332   : > { %v1079_v40 = vsel %vm675_vm5, %v1074_v7, %v1620_v37  ;;  %v1043_v41 = vsel %vm636_vm6, %v1038_v3, %v1615_v39  ;;  %1270 = vmatpush1.bf16.msra.mxu0 %v1250_v30  ;;  %v1044_v42 = vsel %vm636_vm6, %v1615_v39, %v1616_v38  ;;  %v1080_v43 = vsel %vm675_vm5, %v1620_v37, %v1621_v36 }
 0x333   : > { %v1252_v44 = vpack.c.bf16 %v1079_v40, %v1043_v41  ;;  %v1184_v45 = vpop.permute.xlu0 %1183  ;;  %v1624_v46 = vpop.permute.xlu1 %1623  ;;  %v1253_v47 = vpack.c.bf16 %v1080_v43, %v1044_v42 }
 0x334   : > { %v1626_v48 = vunpack.i.h.bf16 %v1624_v46  ;;  %v1625_v49 = vunpack.i.l.bf16 %v1624_v46 }
 0x335   : > { %1271 = vmatprep.subr.bf16.mxu0 %v1253_v47 }
 0x336   : > { %v1117_v52 = vsel %vm658_vm4, %v1112_v19, %v1625_v49  ;;  %1272 = vmatpush1.bf16.msra.mxu0 %v1252_v44  ;;  %v1118_v53 = vsel %vm658_vm4, %v1625_v49, %v1626_v48 }
 0x337   : > { %v1254_v54 = vpack.c.bf16 %v1117_v52, %v2221_v32  ;;  %v1634_v56 = vpop.permute.xlu0 %1633  ;;  %v1629_v57 = vpop.permute.xlu1 %1628  ;;  %v1255_v58 = vpack.c.bf16 %v1118_v53, %v2224_v34 }
 0x338   : > { %v1636_v59 = vunpack.i.h.bf16 %v1634_v56  ;;  %v1635_v55 = vunpack.i.l.bf16 %v1634_v56  ;;  %v1631_v60 = vunpack.i.h.bf16 %v1629_v57  ;;  %v1630_v61 = vunpack.i.l.bf16 %v1629_v57 }
 0x339   : > { %1273 = vmatprep.subr.bf16.mxu0 %v1255_v58 }
 0x33a   : > { %v1189_v62 = vsel %vm581_vm1, %v1184_v45, %v1635_v55  ;;  %v1153_v63 = vsel %vm619_vm3, %v1148_v18, %v1630_v61  ;;  %1274 = vmatpush1.bf16.msra.mxu0 %v1254_v54  ;;  %v1154_v0 = vsel %vm619_vm3, %v1630_v61, %v1631_v60  ;;  %v1190_v1 = vsel %vm581_vm1, %v1635_v55, %v1636_v59 }
 0x33b   : > { %v1256_v2 = vpack.c.bf16 %v1189_v62, %v1153_v63  ;;  %v1639_v32 = vpop.permute.xlu1 %1638  ;;  %v1257_v4 = vpack.c.bf16 %v1190_v1, %v1154_v0  ;;  %v1224_v34 = vpop.permute.xlu0 %1223 }
 0x33c   : > { %v1641_v5 = vunpack.i.h.bf16 %v1639_v32  ;;  %v1640_v6 = vunpack.i.l.bf16 %v1639_v32 }
 0x33d   : > { %1275 = vmatprep.subr.bf16.mxu0 %v1257_v4 }
 0x33e   : > { %v1226_v8 = vsel %vm542_vm2, %v1641_v5, %v1224_v34  ;;  %1276 = vmatpush1.bf16.msra.mxu0 %v1256_v2  ;;  %v1225_v9 = vsel %vm542_vm2, %v1640_v6, %v1641_v5 }
 0x33f   : > { %v1259_v10 = vpack.c.bf16 %v1226_v8, %v1226_v8  ;;  %v1258_v11 = vpack.c.bf16 %v1225_v9, %v1225_v9 }
 0x341   : > { %1467 = vmatprep.subr.msk.bf16.mxu0 %vm865_vm8, %v1259_v10  ;;  %v1264_v12 = vsel %vm865_vm8, %v1258_v11, 0 }
 0x342   : > { %1278 = vmatpush1.bf16.msra.mxu0 %v1264_v12 }
 0x345   : > { %1468 = vmatmul.mubr.msk.bf16.vlgmr.msra.gmra.mrb[4].mxu0 %vm861_vm9, %v1231_v13 }
 0x34c   : > { %v1314_v14 = vpop.permute.xlu1 %1313  ;;  %v1322_v3 = vpop.permute.xlu0 %1321 }
 0x418   : > { %v1303_v15 = vpop.f32.mrb[4].mxu0 }
 0x419   : > { %v1316_v16 = vmul.f32 %v1314_v14, %v1303_v15  ;;  %v1305_v17 = vpop.f32.mrb[5].mxu0 }
 0x41a   : > { %v1317_v7 = vmul.f32 %v1314_v14, %v1305_v17  ;;  %v1307_v18 = vpop.f32.mrb[6].mxu0 }
 0x41b   : > { %v1324_v19 = vadd.f32 %v1322_v3, %v1316_v16  ;;  %v1308_v20 = vpop.f32.mrb[7].mxu0 }
 0x41c   : > { %v1325_v21 = vadd.f32 %v1322_v3, %v1317_v7 }
 0x41d   : > { %v1326_v22 = vadd.f32 %v1324_v19, %v2106_v50 }
 0x41e   : > { %v1327_v23 = vadd.f32 %v1325_v21, %v2109_v51 }
 0x41f   : > { %v1328_v24 = vmax.f32 %v1326_v22, 0.0 }
 0x420   : > { %v1329_v25 = vmax.f32 %v1327_v23, 0.0 }
 0x421   : > { %1330 = vst [vmem:[%s419_s13] sm:$0xff] %v1328_v24 }
 0x422   : > { %1331 = vst [vmem:[%s419_s13 + $0x8] sm:$0xff] %v1329_v25 }
 0x423   : > { %1741 = shalt.err (!%p1738_p13)
}
 0x424   : > { %s1742_s29 = scalar_lea.hbm %s2299_s23, 256  ;;  %s1746_s12 = scalar_lea.hbm %s2353_s10, 512 }
 0x425   : > { %p1743_p6 = scmp.ne.s32.totalorder %s2299_s23, %s1742_s29  ;;  %p1747_p5 = scmp.lt.u32.totalorder %s2299_s23, %s2353_s10 }
 0x426   : > { %p1748_p8 = scmp.lt.u32.totalorder %s1746_s12, %s1742_s29  ;;  %p1750_p0 = scmp.lt.u32.totalorder %s1742_s29, %s2299_s23 }
 0x427   : > { %p1744_p10 = pnand %p1743_p6, %p2376_p1 }
 0x428   : > { %p1749_p11 = por %p1748_p8, %p1747_p5 }
 0x429   : > { %p1745_p4 = pneg %p1744_p10 }
 0x42a   : > { %p1751_p3 = por %p1750_p0, %p1749_p11 }
 0x42c   : > { %p1752_p7 = pnand %p1751_p3, %p1745_p4 }
 0x42e   : > { %1755 = shalt.err (!%p1752_p7)
}
 0x42f   : > { %1491 = dma.vmem_to_hbm [thread:$0]  (%p2376_p1), %s2301_s25, 256, %s2299_s23, %s1333_s17  }
 0x430 PF: > { %s2377_s19 = sld [smem:[#allocation14_spill]]  ;;  %s2378_s21 = sld [smem:[#allocation15_spill]] }
 0x431   : > { %p2380_p12 = scmp.ge.s32.totalorder %s1798_s16, 2 }
 0x436   : > { %s1359_s27 = sand.u32 1, %s2377_s19   ;;  %p2379_p9 = scmp.ne.s32.totalorder %s2378_s21, 0 }
 0x437   : > { %s1360_s22 = scalar_lea.sflag [#allocation6], %s1359_s27 }
 0x438   : > { %p1505_p2 = pnand %p2380_p12, %p2379_p9 }
 0x43a   : > { %1781 = dma.done.wait (!%p1505_p2), %s1360_s22, 256  }
 0x43b   : > { %1783 = vsyncadd (!%p1505_p2), %s1360_s22, 4294967040  ;;  %p24_p13 = scmp.ge.s32.totalorder %s1981_s28, 4   ;;  %s2381_s13 = smov %s1790_s14 }
 0x43c   : > { %s2382_s14 = smov %s1794_s15  ;;  %s2383_s15 = smov %s1997_s11 }
 0x43d   : > { %s2384_s16 = smov %s1981_s28  ;;  %26 = sbr.rel (!%p24_p13) target bundleno = 6 (0x6), region = 123 }
 0x444   :  { %1365 = vsyncpa [#allocation5], 1 }
 0x445   :  { %1367 = vsyncpa [#allocation5 + $0x1], 1 }
 0x446   :  { %1368 = vsyncpa [#allocation8], 1 }
 0x447   :  { %1369 = vsyncpa [#allocation6], 1 }
 0x448   :  { %1371 = vsyncpa [#allocation6 + $0x1], 1 }

</bundles_post_ra>
